<compile_context>
chip_gen: v5e
topology: v5e:2x2
jax: 0.10.0
libtpu: 0.0.40
codegen_flags: <defaults>
</compile_context>

<pallas_src>
import numpy as np

import jax
import jax.numpy as jnp
from jax import lax
from jax.experimental import pallas as pl
from jax.experimental.pallas import tpu as pltpu


def _round8(n):
    return ((n + 7) // 8) * 8


# ----------------------------------------------------------------------------
# Host-side parameter packing: everything the kernel needs, in ONE f32 slab.
# ----------------------------------------------------------------------------
def _pack_params(params, B, L0, C0, dim):
    """Packs conv weights (BN scale folded in), BN shifts, stride-selection
    matrices, the per-batch mean matrix (1/L folded in) and the FC params into
    a single (rows, >=128) f32 slab.  Row offsets are 8-aligned so every
    in-kernel slice is sublane aligned."""
    pieces = []      # (row_offset, array)
    cursor = 0

    def add(a):
        nonlocal cursor
        a = jnp.asarray(a, jnp.float32)
        off = cursor
        pieces.append((off, a))
        cursor += _round8(int(a.shape[0]))
        return off

    layers = []
    L, cin = L0, C0
    for layer in params["convs"]:
        s = int(layer["stride"])
        k, ci, co = layer["w"].shape                       # (K=3, C_in, C_out)
        assert k == 3 and ci == cin
        # im2col weight (3*C_in, C_out) with the BN scale folded per output col.
        w2d = jnp.reshape(jnp.asarray(layer["w"], jnp.float32), (k * ci, co))
        w2d = w2d * jnp.asarray(layer["scale"], jnp.float32)
        w_off = add(w2d)
        sh_off = add(layer["shift"])                       # (1, C_out)
        L_out = (L - 1) // s + 1
        sel_off = -1
        if s > 1:
            # 0/1 row-selection matrix for the strided layer (block structure
            # over the batch-stacked rows), precomputed on the host.
            R_in, R_out = B * L, B * L_out
            j = np.arange(R_out)
            src = (j // L_out) * L + s * (j % L_out)
            sel = np.zeros((R_out, R_in), np.float32)
            sel[j, src] = 1.0
            sel_off = add(sel)
        layers.append(dict(w_off=w_off, shift_off=sh_off, sel_off=sel_off,
                           cin=ci, cout=co, stride=s, L_in=L, L_out=L_out))
        L, cin = L_out, co

    R_last, c_last = B * L, cin
    # Per-batch time-mean as a (B, R_last) constant with 1/L folded in.
    mm = np.zeros((B, R_last), np.float32)
    for b in range(B):
        mm[b, b * L:(b + 1) * L] = 1.0 / L
    mean_off = add(mm)
    fc_dim = int(params["fc_w"].shape[0])
    fc_w_off = add(params["fc_w"])
    fc_b_off = add(params["fc_b"])

    width = max(128, max(int(a.shape[1]) for _, a in pieces))
    width = ((width + 127) // 128) * 128
    rows = max(_round8(cursor), 8)
    slab = jnp.zeros((rows, width), jnp.float32)
    for off, a in pieces:
        slab = slab.at[off:off + a.shape[0], :a.shape[1]].set(a)

    plan = dict(layers=layers, mean_off=mean_off, R_last=R_last, c_last=c_last,
                fc_w_off=fc_w_off, fc_b_off=fc_b_off, fc_dim=fc_dim)
    return slab, plan


# ----------------------------------------------------------------------------
# Fully fused AudioEncoder forward: one pallas_call, one grid step.
# ----------------------------------------------------------------------------
def audio_encoder_forward(x_ncl, params, dim):
    """x_ncl: (B, chin, L) -- PyTorch Conv1d layout.  Returns (B, dim)."""
    B, C0, L0 = x_ncl.shape
    slab, plan = _pack_params(params, B, L0, C0, dim)
    layers = plan["layers"]
    mean_off, R_last = plan["mean_off"], plan["R_last"]
    c_last, fc_dim = plan["c_last"], plan["fc_dim"]
    fc_w_off, fc_b_off = plan["fc_w_off"], plan["fc_b_off"]

    # Batch-fold: stack all batch elements along the sublane/M axis.
    x_rows = jnp.transpose(x_ncl, (0, 2, 1)).reshape(B * L0, C0)

    def kernel(x_ref, p_ref, o_ref):
        act = x_ref[...].astype(jnp.float32)               # (B*L0, C0)
        R = B * L0
        for lm in layers:
            L, cin, cout = lm["L_in"], lm["cin"], lm["cout"]
            w = p_ref[lm["w_off"]:lm["w_off"] + 3 * cin, 0:cout]
            shift = p_ref[lm["shift_off"]:lm["shift_off"] + 1, 0:cout]
            # Conv taps built in vregs: XLU rolls + per-batch zero-pad edge
            # masks (batch boundaries in the stacked rows must not leak).
            row = lax.broadcasted_iota(jnp.int32, (R, 1), 0)
            left_pad = (row % L) == 0                       # within-batch l == 0
            right_pad = (row % L) == (L - 1)                # within-batch l == L-1
            tap_prev = jnp.where(left_pad, 0.0, pltpu.roll(act, 1, axis=0))
            tap_next = jnp.where(right_pad, 0.0, pltpu.roll(act, R - 1, axis=0))
            taps = jnp.concatenate([tap_prev, act, tap_next], axis=1)   # (R, 3*cin)
            # One MXU matmul per layer (BN scale already folded into w).
            h = jnp.dot(taps, w, preferred_element_type=jnp.float32)    # (R, cout)
            if lm["stride"] > 1:
                # Strided rows picked with a precomputed 0/1 selection matmul.
                # TODO(synk): fold the stride into tap construction instead.
                R_out = B * lm["L_out"]
                sel = p_ref[lm["sel_off"]:lm["sel_off"] + R_out, 0:R]
                h = jnp.dot(sel, h, preferred_element_type=jnp.float32)
                R = R_out
            act = jnp.maximum(h + shift, 0.0)               # folded BN + ReLU
        assert R == R_last
        # Epilogue: per-batch time mean (1/L folded into the constant matrix),
        # Linear (skipped when feat_dim == dim, as in the module) and tanh.
        mm = p_ref[mean_off:mean_off + B, 0:R_last]
        y = jnp.dot(mm, act, preferred_element_type=jnp.float32)        # (B, c_last)
        if c_last != dim:
            fc_w = p_ref[fc_w_off:fc_w_off + fc_dim, 0:dim]
            fc_b = p_ref[fc_b_off:fc_b_off + 1, 0:dim]
            y = jnp.dot(y, fc_w, preferred_element_type=jnp.float32) + fc_b
        o_ref[...] = jnp.tanh(y).astype(o_ref.dtype)

    out = pl.pallas_call(
        kernel,
        out_shape=jax.ShapeDtypeStruct((B, dim), x_ncl.dtype),
        grid=(1,),
        in_specs=[pl.BlockSpec((B * L0, C0), lambda i: (0, 0)),
                  pl.BlockSpec(slab.shape, lambda i: (0, 0))],
        out_specs=pl.BlockSpec((B, dim), lambda i: (0, 0)),
        compiler_params=pltpu.CompilerParams(dimension_semantics=("arbitrary",)),
    )(x_rows, slab)
    return out


# ----------------------------------------------------------------------------
# Deterministic parameter construction mirroring AudioEncoder.__init__
# ----------------------------------------------------------------------------
def build_params(key, nconv=4, dim=32, nchan=8, chin=1, downsample_freq=2, eps=1e-5):
    convs = []
    for iconv in range(nconv):
        if (iconv + 1) % 4 == 0:
            nchan *= 2
        stride = 2 if iconv % downsample_freq == 0 else 1
        key, kw, kg, kb, km, kv = jax.random.split(key, 6)
        # PyTorch Conv1d weight layout is (C_out, C_in, K), bias=False.
        w_oik = jax.random.normal(kw, (nchan, chin, 3), jnp.float32) / jnp.sqrt(3.0 * chin)
        w_kio = jnp.transpose(w_oik, (2, 1, 0))                    # (K, C_in, C_out)
        # BatchNorm1d in eval mode, folded into per-channel scale/shift.
        gamma = 1.0 + 0.1 * jax.random.normal(kg, (nchan,), jnp.float32)
        beta = 0.1 * jax.random.normal(kb, (nchan,), jnp.float32)
        rmean = 0.05 * jax.random.normal(km, (nchan,), jnp.float32)
        rvar = 1.0 + 0.1 * jax.random.uniform(kv, (nchan,), jnp.float32)
        scale = gamma / jnp.sqrt(rvar + eps)
        shift = beta - rmean * scale
        convs.append(dict(w=w_kio, scale=scale.reshape(1, -1),
                          shift=shift.reshape(1, -1), stride=stride))
        chin = nchan
    key, kfw, kfb = jax.random.split(key, 3)
    fc_dim = nchan                                                 # fc_dim=None -> last nchan
    fc_w = jax.random.normal(kfw, (fc_dim, dim), jnp.float32) / jnp.sqrt(float(fc_dim))
    fc_b = 0.1 * jax.random.normal(kfb, (1, dim), jnp.float32)
    return dict(convs=convs, fc_w=fc_w, fc_b=fc_b)


# ----------------------------------------------------------------------------
# Pure-JAX reference (for correctness check only)
# ----------------------------------------------------------------------------
def reference_forward(x_ncl, params, dim):
    h = x_ncl                                                      # (B, C, L)
    for layer in params["convs"]:
        w = jnp.transpose(layer["w"], (2, 1, 0))                   # (C_out, C_in, K)
        h = lax.conv_general_dilated(h, w, (layer["stride"],), [(1, 1)],
                                     dimension_numbers=("NCH", "OIH", "NCH"))
        scale = layer["scale"][0][None, :, None]
        shift = layer["shift"][0][None, :, None]
        h = jnp.maximum(h * scale + shift, 0.0)
    m = h.mean(-1)                                                 # (B, C)
    if m.shape[1] != dim:
        m = m @ params["fc_w"] + params["fc_b"][0]
    return jnp.tanh(m)


if __name__ == "__main__":
    key = jax.random.PRNGKey(0)
    pkey, xkey = jax.random.split(key)

    # Small config consistent with the module: nconv=4, nchan=8 (doubles to 16
    # at the 4th conv), dim=32, chin=1, downsample_freq=2.
    # Input follows PyTorch Conv1d NCL: (batch=2, chin=1, length=64).
    nconv, dim, nchan, chin = 4, 32, 8, 1
    params = build_params(pkey, nconv=nconv, dim=dim, nchan=nchan, chin=chin)
    x = jax.random.normal(xkey, (2, chin, 64), jnp.float32)

    out = audio_encoder_forward(x, params, dim)
    out = jax.block_until_ready(out)

    ref = reference_forward(x, params, dim)
    assert out.shape == (2, dim), out.shape
    assert jnp.allclose(out, ref, atol=1e-3, rtol=1e-3), float(jnp.max(jnp.abs(out - ref)))
    print("KERNEL_OK")
</pallas_src>

<mosaic_0001>
module attributes {stable_mosaic.version = 11 : i64} {
  func.func @kernel(%arg0: i32, %arg1: memref<128x1xf32, #tpu.memory_space<vmem>>, %arg2: memref<240x128xf32, #tpu.memory_space<vmem>>, %arg3: memref<2x32xf32, #tpu.memory_space<vmem>>) attributes {dimension_semantics = [#tpu.dimension_semantics<arbitrary>], iteration_bounds = array<i64: 1>, scalar_prefetch = 0 : i64, scratch_operands = 0 : i64, tpu.core_type = #tpu.core_type<tc>, window_params = [{pipeline_mode = #tpu.pipeline_mode<synchronous>, transform_indices = @transform_0, window_bounds = array<i64: 128, 1>}, {pipeline_mode = #tpu.pipeline_mode<synchronous>, transform_indices = @transform_1, window_bounds = array<i64: 240, 128>}, {pipeline_mode = #tpu.pipeline_mode<synchronous>, transform_indices = @transform_2, window_bounds = array<i64: 2, 32>}]} {
    %c0 = arith.constant 0 : index
    %c0_0 = arith.constant 0 : index
    %0 = vector.load %arg1[%c0, %c0_0] : memref<128x1xf32, #tpu.memory_space<vmem>>, vector<128x1xf32>
    %c0_1 = arith.constant 0 : index
    %c0_2 = arith.constant 0 : index
    %1 = vector.load %arg2[%c0_1, %c0_2] : memref<240x128xf32, #tpu.memory_space<vmem>>, vector<3x8xf32>
    %c8 = arith.constant 8 : index
    %c0_3 = arith.constant 0 : index
    %2 = vector.load %arg2[%c8, %c0_3] : memref<240x128xf32, #tpu.memory_space<vmem>>, vector<1x8xf32>
    %3 = tpu.iota {dimensions = array<i32: 0>} : vector<128x1xi32>
    %c64_i32 = arith.constant 64 : i32
    %c0_i32 = arith.constant 0 : i32
    %4 = arith.cmpi eq, %c64_i32, %c0_i32 : i32
    %c1_i32 = arith.constant 1 : i32
    %5 = arith.select %4, %c1_i32, %c64_i32 : i32
    %6 = vector.broadcast %5 : i32 to vector<128x1xi32>
    %7 = arith.remsi %3, %6 : vector<128x1xi32>
    %c0_i32_4 = arith.constant 0 : i32
    %8 = vector.broadcast %c0_i32_4 : i32 to vector<128x1xi32>
    %9 = arith.cmpi ne, %7, %8 : vector<128x1xi32>
    %c0_i32_5 = arith.constant 0 : i32
    %10 = vector.broadcast %c0_i32_5 : i32 to vector<128x1xi32>
    %11 = arith.cmpi slt, %7, %10 : vector<128x1xi32>
    %c0_i32_6 = arith.constant 0 : i32
    %12 = arith.cmpi slt, %5, %c0_i32_6 : i32
    %13 = vector.broadcast %12 : i1 to vector<128x1xi1>
    %14 = vector.broadcast %13 : vector<128x1xi1> to vector<128x1xi1>
    %15 = arith.xori %11, %14 : vector<128x1xi1>
    %16 = arith.andi %15, %9 : vector<128x1xi1>
    %17 = vector.broadcast %5 : i32 to vector<128x1xi32>
    %18 = arith.addi %7, %17 : vector<128x1xi32>
    %19 = arith.select %16, %18, %7 : vector<128x1xi1>, vector<128x1xi32>
    %c0_i32_7 = arith.constant 0 : i32
    %20 = vector.broadcast %c0_i32_7 : i32 to vector<128x1xi32>
    %21 = arith.cmpi eq, %19, %20 : vector<128x1xi32>
    %c64_i32_8 = arith.constant 64 : i32
    %c0_i32_9 = arith.constant 0 : i32
    %22 = arith.cmpi eq, %c64_i32_8, %c0_i32_9 : i32
    %c1_i32_10 = arith.constant 1 : i32
    %23 = arith.select %22, %c1_i32_10, %c64_i32_8 : i32
    %24 = vector.broadcast %23 : i32 to vector<128x1xi32>
    %25 = arith.remsi %3, %24 : vector<128x1xi32>
    %c0_i32_11 = arith.constant 0 : i32
    %26 = vector.broadcast %c0_i32_11 : i32 to vector<128x1xi32>
    %27 = arith.cmpi ne, %25, %26 : vector<128x1xi32>
    %c0_i32_12 = arith.constant 0 : i32
    %28 = vector.broadcast %c0_i32_12 : i32 to vector<128x1xi32>
    %29 = arith.cmpi slt, %25, %28 : vector<128x1xi32>
    %c0_i32_13 = arith.constant 0 : i32
    %30 = arith.cmpi slt, %23, %c0_i32_13 : i32
    %31 = vector.broadcast %30 : i1 to vector<128x1xi1>
    %32 = vector.broadcast %31 : vector<128x1xi1> to vector<128x1xi1>
    %33 = arith.xori %29, %32 : vector<128x1xi1>
    %34 = arith.andi %33, %27 : vector<128x1xi1>
    %35 = vector.broadcast %23 : i32 to vector<128x1xi32>
    %36 = arith.addi %25, %35 : vector<128x1xi32>
    %37 = arith.select %34, %36, %25 : vector<128x1xi1>, vector<128x1xi32>
    %c63_i32 = arith.constant 63 : i32
    %38 = vector.broadcast %c63_i32 : i32 to vector<128x1xi32>
    %39 = arith.cmpi eq, %37, %38 : vector<128x1xi32>
    %c1_i32_14 = arith.constant 1 : i32
    %40 = tpu.dynamic_rotate %0 by %c1_i32_14 dim 0 : vector<128x1xf32>, i32 -> vector<128x1xf32>
    %cst = arith.constant 0.000000e+00 : f32
    %41 = vector.broadcast %cst : f32 to vector<128x1xf32>
    %42 = arith.select %21, %41, %40 : vector<128x1xi1>, vector<128x1xf32>
    %c127_i32 = arith.constant 127 : i32
    %43 = tpu.dynamic_rotate %0 by %c127_i32 dim 0 : vector<128x1xf32>, i32 -> vector<128x1xf32>
    %cst_15 = arith.constant 0.000000e+00 : f32
    %44 = vector.broadcast %cst_15 : f32 to vector<128x1xf32>
    %45 = arith.select %39, %44, %43 : vector<128x1xi1>, vector<128x1xf32>
    %46 = tpu.concatenate %42, %0, %45 in 1 : vector<128x1xf32>, vector<128x1xf32>, vector<128x1xf32> -> vector<128x3xf32>
    %cst_16 = arith.constant dense<0.000000e+00> : vector<128x8xf32>
    %47 = tpu.matmul %46, %1, %cst_16 {dimension_numbers = #tpu.dot_dimension_numbers<[1], [0], [0], [1], [0, 0, 1, 1], [], []>} : vector<128x3xf32>, vector<3x8xf32>, vector<128x8xf32> -> vector<128x8xf32>
    %c16 = arith.constant 16 : index
    %c0_17 = arith.constant 0 : index
    %48 = vector.load %arg2[%c16, %c0_17] : memref<240x128xf32, #tpu.memory_space<vmem>>, vector<64x128xf32>
    %cst_18 = arith.constant dense<0.000000e+00> : vector<64x8xf32>
    %49 = tpu.matmul %48, %47, %cst_18 {dimension_numbers = #tpu.dot_dimension_numbers<[1], [0], [0], [1], [0, 0, 1, 1], [], []>} : vector<64x128xf32>, vector<128x8xf32>, vector<64x8xf32> -> vector<64x8xf32>
    %50 = vector.broadcast %2 : vector<1x8xf32> to vector<64x8xf32>
    %51 = arith.addf %49, %50 : vector<64x8xf32>
    %cst_19 = arith.constant 0.000000e+00 : f32
    %52 = vector.broadcast %cst_19 : f32 to vector<64x8xf32>
    %53 = arith.maximumf %51, %52 : vector<64x8xf32>
    %c80 = arith.constant 80 : index
    %c0_20 = arith.constant 0 : index
    %54 = vector.load %arg2[%c80, %c0_20] : memref<240x128xf32, #tpu.memory_space<vmem>>, vector<24x8xf32>
    %c104 = arith.constant 104 : index
    %c0_21 = arith.constant 0 : index
    %55 = vector.load %arg2[%c104, %c0_21] : memref<240x128xf32, #tpu.memory_space<vmem>>, vector<1x8xf32>
    %56 = tpu.iota {dimensions = array<i32: 0>} : vector<64x1xi32>
    %c32_i32 = arith.constant 32 : i32
    %c0_i32_22 = arith.constant 0 : i32
    %57 = arith.cmpi eq, %c32_i32, %c0_i32_22 : i32
    %c1_i32_23 = arith.constant 1 : i32
    %58 = arith.select %57, %c1_i32_23, %c32_i32 : i32
    %59 = vector.broadcast %58 : i32 to vector<64x1xi32>
    %60 = arith.remsi %56, %59 : vector<64x1xi32>
    %c0_i32_24 = arith.constant 0 : i32
    %61 = vector.broadcast %c0_i32_24 : i32 to vector<64x1xi32>
    %62 = arith.cmpi ne, %60, %61 : vector<64x1xi32>
    %c0_i32_25 = arith.constant 0 : i32
    %63 = vector.broadcast %c0_i32_25 : i32 to vector<64x1xi32>
    %64 = arith.cmpi slt, %60, %63 : vector<64x1xi32>
    %c0_i32_26 = arith.constant 0 : i32
    %65 = arith.cmpi slt, %58, %c0_i32_26 : i32
    %66 = vector.broadcast %65 : i1 to vector<64x1xi1>
    %67 = vector.broadcast %66 : vector<64x1xi1> to vector<64x1xi1>
    %68 = arith.xori %64, %67 : vector<64x1xi1>
    %69 = arith.andi %68, %62 : vector<64x1xi1>
    %70 = vector.broadcast %58 : i32 to vector<64x1xi32>
    %71 = arith.addi %60, %70 : vector<64x1xi32>
    %72 = arith.select %69, %71, %60 : vector<64x1xi1>, vector<64x1xi32>
    %c0_i32_27 = arith.constant 0 : i32
    %73 = vector.broadcast %c0_i32_27 : i32 to vector<64x1xi32>
    %74 = arith.cmpi eq, %72, %73 : vector<64x1xi32>
    %c32_i32_28 = arith.constant 32 : i32
    %c0_i32_29 = arith.constant 0 : i32
    %75 = arith.cmpi eq, %c32_i32_28, %c0_i32_29 : i32
    %c1_i32_30 = arith.constant 1 : i32
    %76 = arith.select %75, %c1_i32_30, %c32_i32_28 : i32
    %77 = vector.broadcast %76 : i32 to vector<64x1xi32>
    %78 = arith.remsi %56, %77 : vector<64x1xi32>
    %c0_i32_31 = arith.constant 0 : i32
    %79 = vector.broadcast %c0_i32_31 : i32 to vector<64x1xi32>
    %80 = arith.cmpi ne, %78, %79 : vector<64x1xi32>
    %c0_i32_32 = arith.constant 0 : i32
    %81 = vector.broadcast %c0_i32_32 : i32 to vector<64x1xi32>
    %82 = arith.cmpi slt, %78, %81 : vector<64x1xi32>
    %c0_i32_33 = arith.constant 0 : i32
    %83 = arith.cmpi slt, %76, %c0_i32_33 : i32
    %84 = vector.broadcast %83 : i1 to vector<64x1xi1>
    %85 = vector.broadcast %84 : vector<64x1xi1> to vector<64x1xi1>
    %86 = arith.xori %82, %85 : vector<64x1xi1>
    %87 = arith.andi %86, %80 : vector<64x1xi1>
    %88 = vector.broadcast %76 : i32 to vector<64x1xi32>
    %89 = arith.addi %78, %88 : vector<64x1xi32>
    %90 = arith.select %87, %89, %78 : vector<64x1xi1>, vector<64x1xi32>
    %c31_i32 = arith.constant 31 : i32
    %91 = vector.broadcast %c31_i32 : i32 to vector<64x1xi32>
    %92 = arith.cmpi eq, %90, %91 : vector<64x1xi32>
    %c1_i32_34 = arith.constant 1 : i32
    %93 = tpu.dynamic_rotate %53 by %c1_i32_34 dim 0 : vector<64x8xf32>, i32 -> vector<64x8xf32>
    %cst_35 = arith.constant 0.000000e+00 : f32
    %94 = vector.shape_cast %74 : vector<64x1xi1> to vector<64x1xi1>
    %95 = vector.broadcast %94 : vector<64x1xi1> to vector<64x8xi1>
    %96 = vector.broadcast %cst_35 : f32 to vector<64x8xf32>
    %97 = arith.select %95, %96, %93 : vector<64x8xi1>, vector<64x8xf32>
    %c63_i32_36 = arith.constant 63 : i32
    %98 = tpu.dynamic_rotate %53 by %c63_i32_36 dim 0 : vector<64x8xf32>, i32 -> vector<64x8xf32>
    %cst_37 = arith.constant 0.000000e+00 : f32
    %99 = vector.shape_cast %92 : vector<64x1xi1> to vector<64x1xi1>
    %100 = vector.broadcast %99 : vector<64x1xi1> to vector<64x8xi1>
    %101 = vector.broadcast %cst_37 : f32 to vector<64x8xf32>
    %102 = arith.select %100, %101, %98 : vector<64x8xi1>, vector<64x8xf32>
    %103 = tpu.concatenate %97, %53, %102 in 1 : vector<64x8xf32>, vector<64x8xf32>, vector<64x8xf32> -> vector<64x24xf32>
    %cst_38 = arith.constant dense<0.000000e+00> : vector<64x8xf32>
    %104 = tpu.matmul %103, %54, %cst_38 {dimension_numbers = #tpu.dot_dimension_numbers<[1], [0], [0], [1], [0, 0, 1, 1], [], []>} : vector<64x24xf32>, vector<24x8xf32>, vector<64x8xf32> -> vector<64x8xf32>
    %105 = vector.broadcast %55 : vector<1x8xf32> to vector<64x8xf32>
    %106 = arith.addf %104, %105 : vector<64x8xf32>
    %cst_39 = arith.constant 0.000000e+00 : f32
    %107 = vector.broadcast %cst_39 : f32 to vector<64x8xf32>
    %108 = arith.maximumf %106, %107 : vector<64x8xf32>
    %c112 = arith.constant 112 : index
    %c0_40 = arith.constant 0 : index
    %109 = vector.load %arg2[%c112, %c0_40] : memref<240x128xf32, #tpu.memory_space<vmem>>, vector<24x8xf32>
    %c136 = arith.constant 136 : index
    %c0_41 = arith.constant 0 : index
    %110 = vector.load %arg2[%c136, %c0_41] : memref<240x128xf32, #tpu.memory_space<vmem>>, vector<1x8xf32>
    %111 = tpu.iota {dimensions = array<i32: 0>} : vector<64x1xi32>
    %c32_i32_42 = arith.constant 32 : i32
    %c0_i32_43 = arith.constant 0 : i32
    %112 = arith.cmpi eq, %c32_i32_42, %c0_i32_43 : i32
    %c1_i32_44 = arith.constant 1 : i32
    %113 = arith.select %112, %c1_i32_44, %c32_i32_42 : i32
    %114 = vector.broadcast %113 : i32 to vector<64x1xi32>
    %115 = arith.remsi %111, %114 : vector<64x1xi32>
    %c0_i32_45 = arith.constant 0 : i32
    %116 = vector.broadcast %c0_i32_45 : i32 to vector<64x1xi32>
    %117 = arith.cmpi ne, %115, %116 : vector<64x1xi32>
    %c0_i32_46 = arith.constant 0 : i32
    %118 = vector.broadcast %c0_i32_46 : i32 to vector<64x1xi32>
    %119 = arith.cmpi slt, %115, %118 : vector<64x1xi32>
    %c0_i32_47 = arith.constant 0 : i32
    %120 = arith.cmpi slt, %113, %c0_i32_47 : i32
    %121 = vector.broadcast %120 : i1 to vector<64x1xi1>
    %122 = vector.broadcast %121 : vector<64x1xi1> to vector<64x1xi1>
    %123 = arith.xori %119, %122 : vector<64x1xi1>
    %124 = arith.andi %123, %117 : vector<64x1xi1>
    %125 = vector.broadcast %113 : i32 to vector<64x1xi32>
    %126 = arith.addi %115, %125 : vector<64x1xi32>
    %127 = arith.select %124, %126, %115 : vector<64x1xi1>, vector<64x1xi32>
    %c0_i32_48 = arith.constant 0 : i32
    %128 = vector.broadcast %c0_i32_48 : i32 to vector<64x1xi32>
    %129 = arith.cmpi eq, %127, %128 : vector<64x1xi32>
    %c32_i32_49 = arith.constant 32 : i32
    %c0_i32_50 = arith.constant 0 : i32
    %130 = arith.cmpi eq, %c32_i32_49, %c0_i32_50 : i32
    %c1_i32_51 = arith.constant 1 : i32
    %131 = arith.select %130, %c1_i32_51, %c32_i32_49 : i32
    %132 = vector.broadcast %131 : i32 to vector<64x1xi32>
    %133 = arith.remsi %111, %132 : vector<64x1xi32>
    %c0_i32_52 = arith.constant 0 : i32
    %134 = vector.broadcast %c0_i32_52 : i32 to vector<64x1xi32>
    %135 = arith.cmpi ne, %133, %134 : vector<64x1xi32>
    %c0_i32_53 = arith.constant 0 : i32
    %136 = vector.broadcast %c0_i32_53 : i32 to vector<64x1xi32>
    %137 = arith.cmpi slt, %133, %136 : vector<64x1xi32>
    %c0_i32_54 = arith.constant 0 : i32
    %138 = arith.cmpi slt, %131, %c0_i32_54 : i32
    %139 = vector.broadcast %138 : i1 to vector<64x1xi1>
    %140 = vector.broadcast %139 : vector<64x1xi1> to vector<64x1xi1>
    %141 = arith.xori %137, %140 : vector<64x1xi1>
    %142 = arith.andi %141, %135 : vector<64x1xi1>
    %143 = vector.broadcast %131 : i32 to vector<64x1xi32>
    %144 = arith.addi %133, %143 : vector<64x1xi32>
    %145 = arith.select %142, %144, %133 : vector<64x1xi1>, vector<64x1xi32>
    %c31_i32_55 = arith.constant 31 : i32
    %146 = vector.broadcast %c31_i32_55 : i32 to vector<64x1xi32>
    %147 = arith.cmpi eq, %145, %146 : vector<64x1xi32>
    %c1_i32_56 = arith.constant 1 : i32
    %148 = tpu.dynamic_rotate %108 by %c1_i32_56 dim 0 : vector<64x8xf32>, i32 -> vector<64x8xf32>
    %cst_57 = arith.constant 0.000000e+00 : f32
    %149 = vector.shape_cast %129 : vector<64x1xi1> to vector<64x1xi1>
    %150 = vector.broadcast %149 : vector<64x1xi1> to vector<64x8xi1>
    %151 = vector.broadcast %cst_57 : f32 to vector<64x8xf32>
    %152 = arith.select %150, %151, %148 : vector<64x8xi1>, vector<64x8xf32>
    %c63_i32_58 = arith.constant 63 : i32
    %153 = tpu.dynamic_rotate %108 by %c63_i32_58 dim 0 : vector<64x8xf32>, i32 -> vector<64x8xf32>
    %cst_59 = arith.constant 0.000000e+00 : f32
    %154 = vector.shape_cast %147 : vector<64x1xi1> to vector<64x1xi1>
    %155 = vector.broadcast %154 : vector<64x1xi1> to vector<64x8xi1>
    %156 = vector.broadcast %cst_59 : f32 to vector<64x8xf32>
    %157 = arith.select %155, %156, %153 : vector<64x8xi1>, vector<64x8xf32>
    %158 = tpu.concatenate %152, %108, %157 in 1 : vector<64x8xf32>, vector<64x8xf32>, vector<64x8xf32> -> vector<64x24xf32>
    %cst_60 = arith.constant dense<0.000000e+00> : vector<64x8xf32>
    %159 = tpu.matmul %158, %109, %cst_60 {dimension_numbers = #tpu.dot_dimension_numbers<[1], [0], [0], [1], [0, 0, 1, 1], [], []>} : vector<64x24xf32>, vector<24x8xf32>, vector<64x8xf32> -> vector<64x8xf32>
    %c144 = arith.constant 144 : index
    %c0_61 = arith.constant 0 : index
    %160 = vector.load %arg2[%c144, %c0_61] : memref<240x128xf32, #tpu.memory_space<vmem>>, vector<32x64xf32>
    %cst_62 = arith.constant dense<0.000000e+00> : vector<32x8xf32>
    %161 = tpu.matmul %160, %159, %cst_62 {dimension_numbers = #tpu.dot_dimension_numbers<[1], [0], [0], [1], [0, 0, 1, 1], [], []>} : vector<32x64xf32>, vector<64x8xf32>, vector<32x8xf32> -> vector<32x8xf32>
    %162 = vector.broadcast %110 : vector<1x8xf32> to vector<32x8xf32>
    %163 = arith.addf %161, %162 : vector<32x8xf32>
    %cst_63 = arith.constant 0.000000e+00 : f32
    %164 = vector.broadcast %cst_63 : f32 to vector<32x8xf32>
    %165 = arith.maximumf %163, %164 : vector<32x8xf32>
    %c176 = arith.constant 176 : index
    %c0_64 = arith.constant 0 : index
    %166 = vector.load %arg2[%c176, %c0_64] : memref<240x128xf32, #tpu.memory_space<vmem>>, vector<24x16xf32>
    %c200 = arith.constant 200 : index
    %c0_65 = arith.constant 0 : index
    %167 = vector.load %arg2[%c200, %c0_65] : memref<240x128xf32, #tpu.memory_space<vmem>>, vector<1x16xf32>
    %168 = tpu.iota {dimensions = array<i32: 0>} : vector<32x1xi32>
    %c16_i32 = arith.constant 16 : i32
    %c0_i32_66 = arith.constant 0 : i32
    %169 = arith.cmpi eq, %c16_i32, %c0_i32_66 : i32
    %c1_i32_67 = arith.constant 1 : i32
    %170 = arith.select %169, %c1_i32_67, %c16_i32 : i32
    %171 = vector.broadcast %170 : i32 to vector<32x1xi32>
    %172 = arith.remsi %168, %171 : vector<32x1xi32>
    %c0_i32_68 = arith.constant 0 : i32
    %173 = vector.broadcast %c0_i32_68 : i32 to vector<32x1xi32>
    %174 = arith.cmpi ne, %172, %173 : vector<32x1xi32>
    %c0_i32_69 = arith.constant 0 : i32
    %175 = vector.broadcast %c0_i32_69 : i32 to vector<32x1xi32>
    %176 = arith.cmpi slt, %172, %175 : vector<32x1xi32>
    %c0_i32_70 = arith.constant 0 : i32
    %177 = arith.cmpi slt, %170, %c0_i32_70 : i32
    %178 = vector.broadcast %177 : i1 to vector<32x1xi1>
    %179 = vector.broadcast %178 : vector<32x1xi1> to vector<32x1xi1>
    %180 = arith.xori %176, %179 : vector<32x1xi1>
    %181 = arith.andi %180, %174 : vector<32x1xi1>
    %182 = vector.broadcast %170 : i32 to vector<32x1xi32>
    %183 = arith.addi %172, %182 : vector<32x1xi32>
    %184 = arith.select %181, %183, %172 : vector<32x1xi1>, vector<32x1xi32>
    %c0_i32_71 = arith.constant 0 : i32
    %185 = vector.broadcast %c0_i32_71 : i32 to vector<32x1xi32>
    %186 = arith.cmpi eq, %184, %185 : vector<32x1xi32>
    %c16_i32_72 = arith.constant 16 : i32
    %c0_i32_73 = arith.constant 0 : i32
    %187 = arith.cmpi eq, %c16_i32_72, %c0_i32_73 : i32
    %c1_i32_74 = arith.constant 1 : i32
    %188 = arith.select %187, %c1_i32_74, %c16_i32_72 : i32
    %189 = vector.broadcast %188 : i32 to vector<32x1xi32>
    %190 = arith.remsi %168, %189 : vector<32x1xi32>
    %c0_i32_75 = arith.constant 0 : i32
    %191 = vector.broadcast %c0_i32_75 : i32 to vector<32x1xi32>
    %192 = arith.cmpi ne, %190, %191 : vector<32x1xi32>
    %c0_i32_76 = arith.constant 0 : i32
    %193 = vector.broadcast %c0_i32_76 : i32 to vector<32x1xi32>
    %194 = arith.cmpi slt, %190, %193 : vector<32x1xi32>
    %c0_i32_77 = arith.constant 0 : i32
    %195 = arith.cmpi slt, %188, %c0_i32_77 : i32
    %196 = vector.broadcast %195 : i1 to vector<32x1xi1>
    %197 = vector.broadcast %196 : vector<32x1xi1> to vector<32x1xi1>
    %198 = arith.xori %194, %197 : vector<32x1xi1>
    %199 = arith.andi %198, %192 : vector<32x1xi1>
    %200 = vector.broadcast %188 : i32 to vector<32x1xi32>
    %201 = arith.addi %190, %200 : vector<32x1xi32>
    %202 = arith.select %199, %201, %190 : vector<32x1xi1>, vector<32x1xi32>
    %c15_i32 = arith.constant 15 : i32
    %203 = vector.broadcast %c15_i32 : i32 to vector<32x1xi32>
    %204 = arith.cmpi eq, %202, %203 : vector<32x1xi32>
    %c1_i32_78 = arith.constant 1 : i32
    %205 = tpu.dynamic_rotate %165 by %c1_i32_78 dim 0 : vector<32x8xf32>, i32 -> vector<32x8xf32>
    %cst_79 = arith.constant 0.000000e+00 : f32
    %206 = vector.shape_cast %186 : vector<32x1xi1> to vector<32x1xi1>
    %207 = vector.broadcast %206 : vector<32x1xi1> to vector<32x8xi1>
    %208 = vector.broadcast %cst_79 : f32 to vector<32x8xf32>
    %209 = arith.select %207, %208, %205 : vector<32x8xi1>, vector<32x8xf32>
    %c31_i32_80 = arith.constant 31 : i32
    %210 = tpu.dynamic_rotate %165 by %c31_i32_80 dim 0 : vector<32x8xf32>, i32 -> vector<32x8xf32>
    %cst_81 = arith.constant 0.000000e+00 : f32
    %211 = vector.shape_cast %204 : vector<32x1xi1> to vector<32x1xi1>
    %212 = vector.broadcast %211 : vector<32x1xi1> to vector<32x8xi1>
    %213 = vector.broadcast %cst_81 : f32 to vector<32x8xf32>
    %214 = arith.select %212, %213, %210 : vector<32x8xi1>, vector<32x8xf32>
    %215 = tpu.concatenate %209, %165, %214 in 1 : vector<32x8xf32>, vector<32x8xf32>, vector<32x8xf32> -> vector<32x24xf32>
    %cst_82 = arith.constant dense<0.000000e+00> : vector<32x16xf32>
    %216 = tpu.matmul %215, %166, %cst_82 {dimension_numbers = #tpu.dot_dimension_numbers<[1], [0], [0], [1], [0, 0, 1, 1], [], []>} : vector<32x24xf32>, vector<24x16xf32>, vector<32x16xf32> -> vector<32x16xf32>
    %217 = vector.broadcast %167 : vector<1x16xf32> to vector<32x16xf32>
    %218 = arith.addf %216, %217 : vector<32x16xf32>
    %cst_83 = arith.constant 0.000000e+00 : f32
    %219 = vector.broadcast %cst_83 : f32 to vector<32x16xf32>
    %220 = arith.maximumf %218, %219 : vector<32x16xf32>
    %c208 = arith.constant 208 : index
    %c0_84 = arith.constant 0 : index
    %221 = vector.load %arg2[%c208, %c0_84] : memref<240x128xf32, #tpu.memory_space<vmem>>, vector<2x32xf32>
    %cst_85 = arith.constant dense<0.000000e+00> : vector<2x16xf32>
    %222 = tpu.matmul %221, %220, %cst_85 {dimension_numbers = #tpu.dot_dimension_numbers<[1], [0], [0], [1], [0, 0, 1, 1], [], []>} : vector<2x32xf32>, vector<32x16xf32>, vector<2x16xf32> -> vector<2x16xf32>
    %c216 = arith.constant 216 : index
    %c0_86 = arith.constant 0 : index
    %223 = vector.load %arg2[%c216, %c0_86] : memref<240x128xf32, #tpu.memory_space<vmem>>, vector<16x32xf32>
    %c232 = arith.constant 232 : index
    %c0_87 = arith.constant 0 : index
    %224 = vector.load %arg2[%c232, %c0_87] : memref<240x128xf32, #tpu.memory_space<vmem>>, vector<1x32xf32>
    %cst_88 = arith.constant dense<0.000000e+00> : vector<2x32xf32>
    %225 = tpu.matmul %222, %223, %cst_88 {dimension_numbers = #tpu.dot_dimension_numbers<[1], [0], [0], [1], [0, 0, 1, 1], [], []>} : vector<2x16xf32>, vector<16x32xf32>, vector<2x32xf32> -> vector<2x32xf32>
    %226 = vector.broadcast %224 : vector<1x32xf32> to vector<2x32xf32>
    %227 = arith.addf %225, %226 : vector<2x32xf32>
    %228 = math.tanh %227 : vector<2x32xf32>
    %c0_89 = arith.constant 0 : index
    %c0_90 = arith.constant 0 : index
    %229 = vector.load %arg3[%c0_89, %c0_90] : memref<2x32xf32, #tpu.memory_space<vmem>>, vector<2x32xf32>
    tpu.vector_store %arg3[%c0_89, %c0_90], %228 {strides = array<i32>} : memref<2x32xf32, #tpu.memory_space<vmem>>, vector<2x32xf32>,
    return
  }
  func.func @transform_0(%arg0: i32) -> (i32, i32) {
    %c0_i32 = arith.constant 0 : i32
    %c0_i32_0 = arith.constant 0 : i32
    %c0_i32_1 = arith.constant 0 : i32
    return %c0_i32, %c0_i32_0 : i32, i32
  }
  func.func @transform_1(%arg0: i32) -> (i32, i32) {
    %c0_i32 = arith.constant 0 : i32
    %c0_i32_0 = arith.constant 0 : i32
    %c0_i32_1 = arith.constant 0 : i32
    return %c0_i32, %c0_i32_0 : i32, i32
  }
  func.func @transform_2(%arg0: i32) -> (i32, i32) {
    %c0_i32 = arith.constant 0 : i32
    %c0_i32_0 = arith.constant 0 : i32
    %c0_i32_1 = arith.constant 0 : i32
    return %c0_i32, %c0_i32_0 : i32, i32
  }
}

</mosaic_0001>

<bundles_post_ra>
// kernel: tpu_custom_call.1
= control target key start
LH: loop header
LB: loop body
LE: loop exit
PB: predicated region body
PF: predicated region fallthrough
CT: control target
= control target key end

     0   :  { %7 = vsyncpa [#allocation3], 0  ;;  %s2308_s0 = inlined_call_operand.vmem [shape: f32[128,1], index: 0, kind: input, shape index: {}]   ;;  %s2309_s1 = inlined_call_operand.hbm [shape: f32[240,128], index: 1, kind: input, shape index: {}]   ;;  %s2310_s2 = inlined_call_operand.hbm [shape: f32[2,32], index: 2, kind: output, shape index: {}]  }
   0x1   :  { %8 = vsyncpa [#allocation4], 0  ;;  %s15_s11 = sshll.u32 %s2309_s1, 4  ;;  %s1692_s12 = smov [#allocation2]   ;;  %s16_s11 = int_to_ptr.hbm [resolvable:$true] %s15_s11 }
   0x2   :  { %s17_s13 = sshll.u32 %s1692_s12, 4  ;;  %s1693_s14 = smov 128   ;;  %s18_s13 = int_to_ptr.vmem [resolvable:$true] %s17_s13 }
   0x3   :  { %s1694_s15 = smov 8  }
   0x4   :  { %23 = dma.hbm_to_vmem [thread:$0]  %s16_s11, 3840, %s18_s13, [#allocation3], %s1693_s14, %s1693_s14, %s1694_s15  }
   0x5   :  { %1688 = dma.done.wait [#allocation3], 3840  }
   0x6   :  { %1689 = vsyncadd [#allocation3], 4294963456  ;;  %v46_v0 = vlaneseq  ;;  %v1723_v2 = vld [vmem:[%s2308_s0] sm:$0xff]  ;;  %v1728_v3 = vld [vmem:[%s2308_s0 + $0x8] sm:$0xff]  ;;  %s1695_s21 = smov 1   ;;  %s1696_s26 = smov 2  }
   0x7   :  { %v1733_v4 = vld [vmem:[%s2308_s0 + $0x10] sm:$0xff]  ;;  %401 = vrot.lane.b32.xlu0 %v1723_v2, %s1695_s21  ;;  %403 = vrot.lane.b32.xlu1 %v1728_v3, %s1695_s21  ;;  %v336_v5 = vrot.slane %v1723_v2, 1  ;;  %v337_v6 = vrot.slane %v1728_v3, 1  ;;  %v1745_v8 = vld [vmem:[%s2308_s0 + $0x18] sm:$0xff]  ;;  %v288_v55 = vrot.slane %v1728_v3, 7  ;;  %v287_v56 = vrot.slane %v1723_v2, 7 }
   0x8   :  { %v1718_v1 = vshrl.u32 %v46_v0, 7  ;;  %v338_v7 = vrot.slane %v1733_v4, 1  ;;  %405 = vrot.lane.b32.xlu2 %v1733_v4, %s1695_s21  ;;  %v339_v9 = vrot.slane %v1745_v8, 1  ;;  %v1760_v12 = vld [vmem:[%s2308_s0 + $0x20] sm:$0xff]  ;;  %v1773_v16 = vld [vmem:[%s2308_s0 + $0x28] sm:$0xff]  ;;  %v1784_v18 = vld [vmem:[%s2308_s0 + $0x30] sm:$0xff] }
   0x9   :  { %v340_v14 = vrot.slane %v1760_v12, 1  ;;  %v341_v17 = vrot.slane %v1773_v16, 1  ;;  %v342_v19 = vrot.slane %v1784_v18, 1  ;;  %v1792_v21 = vld [vmem:[%s2308_s0 + $0x38] sm:$0xff]  ;;  %v1807_v25 = vld [vmem:[%s2308_s0 + $0x40] sm:$0xff]  ;;  %v1823_v30 = vld [vmem:[%s2308_s0 + $0x48] sm:$0xff] }
   0xa   :  { %vm352_vm0 = vcmp.lt.s32.totalorder %v1718_v1, 7  ;;  %v343_v23 = vrot.slane %v1792_v21, 1  ;;  %v1802_v24 = vadd.s32 56, %v1718_v1  ;;  %v344_v28 = vrot.slane %v1807_v25, 1  ;;  %v1829_v33 = vld [vmem:[%s2308_s0 + $0x50] sm:$0xff]  ;;  %v1843_v37 = vld [vmem:[%s2308_s0 + $0x58] sm:$0xff] }
   0xb   :  { %v367_v10 = vsel %vm352_vm0, %v336_v5, %v337_v6  ;;  %v366_v11 = vsel %vm352_vm0, %v337_v6, %v338_v7  ;;  %v365_v13 = vsel %vm352_vm0, %v338_v7, %v339_v9  ;;  %v364_v15 = vsel %vm352_vm0, %v339_v9, %v340_v14  ;;  %v1852_v39 = vld [vmem:[%s2308_s0 + $0x70] sm:$0xff]  ;;  %v1857_v40 = vld [vmem:[%s2308_s0 + $0x78] sm:$0xff]  ;;  %v1868_v44 = vld [vmem:[%s2308_s0 + $0x60] sm:$0xff]  ;;  %s1572_s24 = sshll.u32 %s2310_s2, 4  ;;  %s1573_s24 = int_to_ptr.hbm [resolvable:$true] %s1572_s24 }
   0xc   :  { %v363_v20 = vsel %vm352_vm0, %v340_v14, %v341_v17  ;;  %v362_v22 = vsel %vm352_vm0, %v341_v17, %v342_v19  ;;  %v361_v26 = vsel %vm352_vm0, %v342_v19, %v343_v23  ;;  %v116_v27 = vand.u32 63, %v1802_v24  ;;  %v1892_v52 = vld [vmem:[%s2308_s0 + $0x68] sm:$0xff]  ;;  %v44_v58 = vld [vmem:[#allocation2] sm:$0x7]  ;;  %s1697_s0 = smov 16  }
   0xd   :  { %v360_v29 = vsel %vm352_vm0, %v343_v23, %v344_v28  ;;  %v345_v31 = vrot.slane %v1823_v30, 1  ;;  %v346_v35 = vrot.slane %v1829_v33, 1  ;;  %v347_v38 = vrot.slane %v1843_v37, 1 }
   0xe   :  { %vm278_vm1 = vcmp.eq.s32.totalorder %v116_v27, 63  ;;  %v350_v41 = vrot.slane %v1852_v39, 1  ;;  %v351_v42 = vrot.slane %v1857_v40, 1  ;;  %v348_v46 = vrot.slane %v1868_v44, 1 }
   0xf   :  { %465 = vrot.lane.b32.xlu0 %v367_v10, %s1696_s26  ;;  %467 = vrot.lane.b32.xlu1 %v366_v11, %s1696_s26  ;;  %v376_v32 = vsel %vm278_vm1, 0.0, %v360_v29  ;;  %v359_v34 = vsel %vm352_vm0, %v344_v28, %v345_v31  ;;  %v358_v36 = vsel %vm352_vm0, %v345_v31, %v346_v35  ;;  %v357_v43 = vsel %vm352_vm0, %v346_v35, %v347_v38 }
  0x10   :  { %469 = vrot.lane.b32.xlu2 %v365_v13, %s1696_s26  ;;  %v353_v45 = vsel %vm352_vm0, %v350_v41, %v351_v42  ;;  %v62_v47 = vadd.s32 120, %v1718_v1  ;;  %v356_v48 = vsel %vm352_vm0, %v347_v38, %v348_v46  ;;  %v368_v50 = vsel %vm352_vm0, %v351_v42, %v336_v5 }
  0x11   :  { %v349_v53 = vrot.slane %v1892_v52, 1  ;;  %vm303_vm3 = vcmp.lt.s32.totalorder %v1718_v1, 1  ;;  %vm596_vm4 = vcmask 1042432   ;;  %v67_v62 = vand.u32 63, %v1718_v1 }
  0x12   :  { %v172_v49 = vand.u32 63, %v62_v47  ;;  %v318_v57 = vsel %vm303_vm3, %v287_v56, %v288_v55  ;;  %1582 = vmatpush.msk.msra.mxu0 %vm596_vm4, %v44_v58  ;;  %1625 = vmatpush.msk.msra.mxu3 %vm596_vm4, %v44_v58  ;;  %v302_v63 = vrot.slane %v1857_v40, 7  ;;  %vm513_vm6 = vcmask 7168  }
  0x13   :  { %v354_v54 = vsel %vm352_vm0, %v349_v53, %v350_v41  ;;  %v355_v59 = vsel %vm352_vm0, %v348_v46, %v349_v53  ;;  %vm255_vm5 = vcmp.eq.s32.totalorder %v67_v62, 0  ;;  %vm530_vm7 = vcmask 15360  }
  0x14   :  { %vm286_vm2 = vcmp.eq.s32.totalorder %v172_v49, 63  ;;  %v319_v3 = vsel %vm303_vm3, %v302_v63, %v287_v56  ;;  %vm547_vm8 = vcmask 23552   ;;  %v289_v14 = vrot.slane %v1733_v4, 7 }
  0x15   :  { %v384_v51 = vsel %vm286_vm2, 0.0, %v368_v50  ;;  %v320_v5 = vsel %vm255_vm5, 0.0, %v319_v3  ;;  %v290_v23 = vrot.slane %v1745_v8, 7  ;;  %v300_v46 = vrot.slane %v1892_v52, 7 }
  0x16   :  { %v294_v58 = vrot.slane %v1792_v21, 7  ;;  %vm983_vm13 = vcmask 64512   ;;  %vm1002_vm14 = vcmask 195584   ;;  %vm992_vm15 = vcmask 130048  }
  0x17   :  { %407 = vrot.lane.b32.xlu0 %v1745_v8, %s1695_s21  ;;  %471 = vrot.lane.b32.xlu1 %v364_v15, %s1696_s26  ;;  %v316_v4 = vsel %vm303_vm3, %v289_v14, %v290_v23  ;;  %vm1278_vm2 = vcmask 523264  }
  0x18   :  { %409 = vrot.lane.b32.xlu2 %v1760_v12, %s1695_s21 }
  0x1f   :  { %473 = vrot.lane.b32.xlu0 %v363_v20, %s1696_s26  ;;  %411 = vrot.lane.b32.xlu1 %v1773_v16, %s1695_s21 }
  0x20   :  { %475 = vrot.lane.b32.xlu2 %v362_v22, %s1696_s26  ;;  %v317_v22 = vsel %vm303_vm3, %v288_v55, %v289_v14 }
  0x27   :  { %413 = vrot.lane.b32.xlu0 %v1784_v18, %s1695_s21  ;;  %477 = vrot.lane.b32.xlu1 %v361_v26, %s1696_s26 }
  0x28   :  { %415 = vrot.lane.b32.xlu2 %v1792_v21, %s1695_s21 }
  0x2f   :  { %479 = vrot.lane.b32.xlu0 %v376_v32, %s1696_s26  ;;  %417 = vrot.lane.b32.xlu1 %v1807_v25, %s1695_s21 }
  0x30   :  { %481 = vrot.lane.b32.xlu2 %v359_v34, %s1696_s26  ;;  %v291_v34 = vrot.slane %v1760_v12, 7 }
  0x32   :  { %v315_v38 = vsel %vm303_vm3, %v290_v23, %v291_v34 }
  0x37   :  { %419 = vrot.lane.b32.xlu0 %v1823_v30, %s1695_s21  ;;  %483 = vrot.lane.b32.xlu1 %v358_v36, %s1696_s26 }
  0x38   :  { %421 = vrot.lane.b32.xlu2 %v1829_v33, %s1695_s21 }
  0x3f   :  { %485 = vrot.lane.b32.xlu0 %v357_v43, %s1696_s26  ;;  %429 = vrot.lane.b32.xlu1 %v1852_v39, %s1695_s21  ;;  %v292_v43 = vrot.slane %v1773_v16, 7 }
  0x40   :  { %493 = vrot.lane.b32.xlu2 %v353_v45, %s1696_s26  ;;  %v301_v45 = vrot.slane %v1852_v39, 7  ;;  %v293_v39 = vrot.slane %v1784_v18, 7 }
  0x41   :  { %v314_v49 = vsel %vm303_vm3, %v291_v34, %v292_v43 }
  0x42   :  { %v305_v50 = vsel %vm303_vm3, %v300_v46, %v301_v45  ;;  %v313_v56 = vsel %vm303_vm3, %v292_v43, %v293_v39 }
  0x47   :  { %423 = vrot.lane.b32.xlu0 %v1843_v37, %s1695_s21  ;;  %487 = vrot.lane.b32.xlu1 %v356_v48, %s1696_s26 }
  0x48   :  { %431 = vrot.lane.b32.xlu2 %v1857_v40, %s1695_s21 }
  0x4f   :  { %495 = vrot.lane.b32.xlu0 %v384_v51, %s1696_s26  ;;  %425 = vrot.lane.b32.xlu1 %v1868_v44, %s1695_s21 }
  0x50   :  { %489 = vrot.lane.b32.xlu2 %v355_v59, %s1696_s26  ;;  %v55_v59 = vadd.s32 64, %v1718_v1 }
  0x52   :  { %v123_v3 = vand.u32 63, %v55_v59  ;;  %v665_v59 = vld [vmem:[#allocation2 + $0x10] sm:$0xff] }
  0x54   :  { %vm263_vm9 = vcmp.eq.s32.totalorder %v123_v3, 0  ;;  %v672_v3 = vld [vmem:[#allocation2 + $0x48] sm:$0xff] }
  0x57   :  { %427 = vrot.lane.b32.xlu0 %v1892_v52, %s1695_s21  ;;  %491 = vrot.lane.b32.xlu1 %v354_v54, %s1696_s26 }
  0x62   :  { %v406_v60 = vpop.permute.xlu2 %405 }
  0x63   :  { %v516_v26 = vsel %vm513_vm6, %v317_v22, %v406_v60 }
  0x6a   :  { %v470_v61 = vpop.permute.xlu2 %469 }
  0x6b   :  { %v533_v29 = vsel %vm530_vm7, %v516_v26, %v470_v61 }
  0x72   :  { %v410_v6 = vpop.permute.xlu2 %409 }
  0x73   :  { %v518_v42 = vsel %vm513_vm6, %v315_v38, %v410_v6 }
  0x79   :  { %v402_v0 = vpop.permute.xlu0 %401  ;;  %v404_v2 = vpop.permute.xlu1 %403 }
  0x7a   :  { %v514_v7 = vsel %vm513_vm6, %v320_v5, %v402_v0  ;;  %v515_v13 = vsel %vm513_vm6, %v318_v57, %v404_v2  ;;  %v476_v15 = vpop.permute.xlu2 %475  ;;  %v312_v0 = vsel %vm303_vm3, %v293_v39, %v294_v58  ;;  %v295_v5 = vrot.slane %v1807_v25, 7 }
  0x7b   :  { %v304_v25 = vsel %vm303_vm3, %v301_v45, %v302_v63  ;;  %v297_v63 = vrot.slane %v1829_v33, 7 }
  0x81   :  { %v466_v9 = vpop.permute.xlu0 %465  ;;  %v468_v10 = vpop.permute.xlu1 %467 }
  0x82   :  { %v531_v11 = vsel %vm530_vm7, %v514_v7, %v466_v9  ;;  %v532_v20 = vsel %vm530_vm7, %v515_v13, %v468_v10  ;;  %v416_v31 = vpop.permute.xlu2 %415  ;;  %v311_v7 = vsel %vm303_vm3, %v294_v58, %v295_v5 }
  0x83   :  { %1583 = vmatmul.msk.f32.vlgmr.msra.gmra.mxu0 %vm547_vm8, %v531_v11  ;;  %v521_v21 = vsel %vm513_vm6, %v312_v0, %v416_v31  ;;  %v328_v11 = vsel %vm263_vm9, 0.0, %v311_v7  ;;  %v670_v0 = vld [vmem:[#allocation2 + $0x38] sm:$0xff] }
  0x89   :  { %v408_v17 = vpop.permute.xlu0 %407  ;;  %v472_v19 = vpop.permute.xlu1 %471 }
  0x8a   :  { %v517_v32 = vsel %vm513_vm6, %v316_v4, %v408_v17  ;;  %v482_v41 = vpop.permute.xlu2 %481 }
  0x8b   :  { %1584 = vmatmul.msk.f32.gmra.mxu0 %vm547_vm8, %v532_v20  ;;  %v534_v35 = vsel %vm530_vm7, %v517_v32, %v472_v19  ;;  %v299_v32 = vrot.slane %v1868_v44, 7 }
  0x91   :  { %v474_v27 = vpop.permute.xlu0 %473  ;;  %v412_v28 = vpop.permute.xlu1 %411 }
  0x92   :  { %v535_v12 = vsel %vm530_vm7, %v518_v42, %v474_v27  ;;  %v519_v16 = vsel %vm513_vm6, %v314_v49, %v412_v28  ;;  %v422_v51 = vpop.permute.xlu2 %421  ;;  %v298_v27 = vrot.slane %v1843_v37, 7 }
  0x93   :  { %1585 = vmatmul.msk.f32.gmra.mxu0 %vm547_vm8, %v533_v29  ;;  %v536_v53 = vsel %vm530_vm7, %v519_v16, %v476_v15  ;;  %v296_v15 = vrot.slane %v1823_v30, 7 }
  0x94   :  { %v308_v4 = vsel %vm303_vm3, %v297_v63, %v298_v27 }
  0x95   :  { %v310_v22 = vsel %vm303_vm3, %v295_v5, %v296_v15  ;;  %v309_v26 = vsel %vm303_vm3, %v296_v15, %v297_v63  ;;  %v2013_v5 = vld [vmem:[#allocation2 + $0x8] ss:$0 sm:$0xff] }
  0x96   :  { %v524_v28 = vsel %vm513_vm6, %v309_v26, %v422_v51 }
  0x99   :  { %v414_v36 = vpop.permute.xlu0 %413  ;;  %v478_v8 = vpop.permute.xlu1 %477 }
  0x9a   :  { %v520_v57 = vsel %vm513_vm6, %v313_v56, %v414_v36  ;;  %v494_v61 = vpop.permute.xlu2 %493 }
  0x9b   :  { %1586 = vmatmul.msk.f32.gmra.mxu0 %vm547_vm8, %v534_v35  ;;  %v537_v60 = vsel %vm530_vm7, %v520_v57, %v478_v8  ;;  %v307_v35 = vsel %vm303_vm3, %v298_v27, %v299_v32 }
  0xa1   :  { %v480_v47 = vpop.permute.xlu0 %479  ;;  %v418_v48 = vpop.permute.xlu1 %417 }
  0xa2   :  { %v538_v9 = vsel %vm530_vm7, %v521_v21, %v480_v47  ;;  %v432_v13 = vpop.permute.xlu2 %431  ;;  %v522_v14 = vsel %vm513_vm6, %v328_v11, %v418_v48 }
  0xa3   :  { %1587 = vmatmul.msk.f32.gmra.mxu0 %vm547_vm8, %v535_v12  ;;  %v529_v17 = vsel %vm513_vm6, %v304_v25, %v432_v13  ;;  %v539_v19 = vsel %vm530_vm7, %v522_v14, %v482_v41  ;;  %v306_v41 = vsel %vm303_vm3, %v299_v32, %v300_v46 }
  0xa9   :  { %v420_v54 = vpop.permute.xlu0 %419  ;;  %v484_v55 = vpop.permute.xlu1 %483 }
  0xaa   :  { %v523_v40 = vsel %vm513_vm6, %v310_v22, %v420_v54  ;;  %v490_v8 = vpop.permute.xlu2 %489 }
  0xab   :  { %1588 = vmatmul.msk.f32.gmra.mxu0 %vm547_vm8, %v536_v53  ;;  %v540_v30 = vsel %vm530_vm7, %v523_v40, %v484_v55 }
  0xb1   :  { %v486_v18 = vpop.permute.xlu0 %485  ;;  %v430_v62 = vpop.permute.xlu1 %429 }
  0xb2   :  { %v528_v2 = vsel %vm513_vm6, %v305_v50, %v430_v62  ;;  %v541_v31 = vsel %vm530_vm7, %v524_v28, %v486_v18  ;;  %v668_v18 = vld [vmem:[#allocation2 + $0x28] sm:$0xff]  ;;  %v669_v62 = vld [vmem:[#allocation2 + $0x30] sm:$0xff] }
  0xb3   :  { %1589 = vmatmul.msk.f32.gmra.mxu0 %vm547_vm8, %v537_v60  ;;  %v545_v6 = vsel %vm530_vm7, %v528_v2, %v494_v61  ;;  %v666_v60 = vld [vmem:[#allocation2 + $0x18] sm:$0xff]  ;;  %v667_v61 = vld [vmem:[#allocation2 + $0x20] sm:$0xff] }
  0xb4   :  { %1597 = vmatmul.msk.f32.vlgmr.msra.gmra.mxu3 %vm547_vm8, %v545_v6  ;;  %v671_v2 = vld [vmem:[#allocation2 + $0x40] sm:$0xff] }
  0xb9   :  { %v424_v10 = vpop.permute.xlu0 %423  ;;  %v488_v29 = vpop.permute.xlu1 %487 }
  0xba   :  { %v525_v33 = vsel %vm513_vm6, %v308_v4, %v424_v10 }
  0xbb   :  { %1590 = vmatmul.msk.f32.gmra.mxu0 %vm547_vm8, %v538_v9  ;;  %v542_v34 = vsel %vm530_vm7, %v525_v33, %v488_v29  ;;  %v2046_v33 = vadd.s32 24, %v1718_v1 }
  0xc1   :  { %v496_v20 = vpop.permute.xlu0 %495  ;;  %v426_v37 = vpop.permute.xlu1 %425 }
  0xc2   :  { %v546_v23 = vsel %vm530_vm7, %v529_v17, %v496_v20  ;;  %v526_v36 = vsel %vm513_vm6, %v307_v35, %v426_v37 }
  0xc3   :  { %1591 = vmatmul.msk.f32.gmra.mxu0 %vm547_vm8, %v539_v19  ;;  %1598 = vmatmul.msk.f32.gmra.mxu3 %vm547_vm8, %v546_v23  ;;  %v543_v38 = vsel %vm530_vm7, %v526_v36, %v490_v8  ;;  %v752_v36 = vand.u32 31, %v2046_v33 }
  0xc5   :  { %vm2058_vm10 = vcmp.eq.s32.totalorder %v752_v36, 31 }
  0xc9   :  { %v428_v42 = vpop.permute.xlu0 %427  ;;  %v492_v43 = vpop.permute.xlu1 %491 }
  0xca   :  { %v527_v44 = vsel %vm513_vm6, %v306_v41, %v428_v42  ;;  %vm1511_vm6 = vcmask 261120  }
  0xcb   :  { %1592 = vmatmul.msk.f32.gmra.mxu0 %vm547_vm8, %v540_v30  ;;  %v544_v45 = vsel %vm530_vm7, %v527_v44, %v492_v43  ;;  %vm1563_vm7 = vcmask 254976  }
  0xd3   :  { %1593 = vmatmul.msk.f32.gmra.mxu0 %vm547_vm8, %v541_v31 }
  0xdb   :  { %1594 = vmatmul.msk.f32.gmra.mxu0 %vm547_vm8, %v542_v34 }
  0xe3   :  { %1595 = vmatmul.msk.f32.gmra.mxu0 %vm547_vm8, %v543_v38 }
  0xeb   :  { %1596 = vmatmul.msk.f32.gmra.mxu0 %vm547_vm8, %v544_v45 }
 0x100   :  { %v617_v12 = vpop.f32.mrf.mxu0 }
 0x108   :  { %v620_v47 = vpop.f32.mrf.mxu0 }
 0x110   :  { %v623_v48 = vpop.f32.mrf.mxu0 }
 0x118   :  { %v626_v49 = vpop.f32.mrf.mxu0 }
 0x120   :  { %v629_v50 = vpop.f32.mrf.mxu0 }
 0x128   :  { %v632_v16 = vpop.f32.mrf.mxu0 }
 0x130   :  { %v635_v52 = vpop.f32.mrf.mxu0 }
 0x137   :  { %v659_v51 = vpop.f32.mrf.mxu3 }
 0x138   :  { %v638_v39 = vpop.f32.mrf.mxu0 }
 0x140   :  { %v641_v46 = vpop.f32.mrf.mxu0 }
 0x146   :  { %v662_v53 = vpop.f32.mrf.mxu3 }
 0x147   :  { %674 = vmatpush.msra.mxu1 %v662_v53 }
 0x148   :  { %v644_v54 = vpop.f32.mrf.mxu0 }
 0x149   :  { %675 = vmatpush.msra.mxu1 %v659_v51 }
 0x150   :  { %v647_v55 = vpop.f32.mrf.mxu0 }
 0x158   :  { %v650_v56 = vpop.f32.mrf.mxu0 }
 0x160   :  { %v653_v57 = vpop.f32.mrf.mxu0 }
 0x168   :  { %v656_v58 = vpop.f32.mrf.mxu0 }
 0x169   :  { %676 = vmatpush.msra.mxu1 %v656_v58 }
 0x16b   :  { %677 = vmatpush.msra.mxu1 %v653_v57 }
 0x16d   :  { %678 = vmatpush.msra.mxu1 %v650_v56 }
 0x16f   :  { %679 = vmatpush.msra.mxu1 %v647_v55 }
 0x171   :  { %680 = vmatpush.msra.mxu1 %v644_v54 }
 0x173   :  { %681 = vmatpush.msra.mxu1 %v641_v46 }
 0x175   :  { %682 = vmatpush.msra.mxu1 %v638_v39 }
 0x177   :  { %683 = vmatpush.msra.mxu1 %v635_v52 }
 0x179   :  { %684 = vmatpush.msra.mxu1 %v632_v16 }
 0x17b   :  { %685 = vmatpush.msra.mxu1 %v629_v50 }
 0x17d   :  { %686 = vmatpush.msra.mxu1 %v626_v49 }
 0x17f   :  { %687 = vmatpush.msra.mxu1 %v623_v48 }
 0x181   :  { %688 = vmatpush.msra.mxu1 %v620_v47 }
 0x183   :  { %689 = vmatpush.msra.mxu1 %v617_v12 }
 0x184   :  { %690 = vmatmul.f32.vlgmr.msra.gmra.mxu1 %v665_v59  ;;  %v780_v59 = vand.u32 31, %v1802_v24 }
 0x186   :  { %vm2092_vm11 = vcmp.eq.s32.totalorder %v780_v59, 31 }
 0x18c   :  { %693 = vmatmul.f32.gmra.mxu1 %v666_v60 }
 0x194   :  { %696 = vmatmul.f32.gmra.mxu1 %v667_v61 }
 0x19c   :  { %699 = vmatmul.f32.gmra.mxu1 %v668_v18 }
 0x1a4   :  { %702 = vmatmul.f32.gmra.mxu1 %v669_v62 }
 0x1ac   :  { %705 = vmatmul.f32.gmra.mxu1 %v670_v0 }
 0x1b4   :  { %708 = vmatmul.f32.gmra.mxu1 %v671_v2 }
 0x1bc   :  { %711 = vmatmul.f32.gmra.mxu1 %v672_v3 }
 0x201   :  { %v691_v6 = vpop.f32.mrf.mxu1 }
 0x202   :  { %v692_v21 = vadd.f32 %v2013_v5, %v691_v6  ;;  %v725_v6 = vld [vmem:[#allocation2 + $0x60] sm:$0xff] }
 0x203   :  { %1040 = vmatpush.msra.mxu2 %v725_v6 }
 0x204   :  { %v2016_v7 = vmax.f32 %v692_v21, 0.0  ;;  %v724_v21 = vld [vmem:[#allocation2 + $0x58] sm:$0xff] }
 0x205   :  { %1041 = vmatpush.msra.mxu2 %v724_v21 }
 0x206   :  { %927 = vrot.lane.b32.xlu2 %v2016_v7, %s1694_s15  ;;  %v839_v25 = vrot.slane %v2016_v7, 7  ;;  %v879_v13 = vrot.slane %v2016_v7, 1  ;;  %v723_v7 = vld [vmem:[#allocation2 + $0x50] sm:$0xff] }
 0x207   :  { %1042 = vmatpush.msra.mxu2 %v723_v7 }
 0x209   :  { %v694_v9 = vpop.f32.mrf.mxu1 }
 0x20a   :  { %v695_v10 = vadd.f32 %v2013_v5, %v694_v9  ;;  %v731_v9 = vand.u32 31, %v1718_v1 }
 0x20c   :  { %v716_v11 = vmax.f32 %v695_v10, 0.0  ;;  %vm2114_vm12 = vcmp.eq.s32.totalorder %v731_v9, 0 }
 0x20e   :  { %v840_v14 = vrot.slane %v716_v11, 7  ;;  %v880_v15 = vrot.slane %v716_v11, 1  ;;  %929 = vrot.lane.b32.xlu1 %v716_v11, %s1694_s15 }
 0x210   :  { %v893_v17 = vsel %vm352_vm0, %v879_v13, %v880_v15  ;;  %v2032_v19 = vsel %vm303_vm3, %v839_v25, %v840_v14 }
 0x211   :  { %v697_v20 = vpop.f32.mrf.mxu1  ;;  %959 = vrot.lane.b32.xlu0 %v893_v17, %s1697_s0 }
 0x212   :  { %v698_v22 = vadd.f32 %v2013_v5, %v697_v20 }
 0x214   :  { %v717_v23 = vmax.f32 %v698_v22, 0.0 }
 0x216   :  { %v841_v40 = vrot.slane %v717_v23, 7  ;;  %v881_v63 = vrot.slane %v717_v23, 1 }
 0x218   :  { %v892_v30 = vsel %vm352_vm0, %v880_v15, %v881_v63  ;;  %v2040_v26 = vsel %vm303_vm3, %v840_v14, %v841_v40 }
 0x219   :  { %v700_v27 = vpop.f32.mrf.mxu1  ;;  %961 = vrot.lane.b32.xlu2 %v892_v30, %s1697_s0  ;;  %931 = vrot.lane.b32.xlu0 %v717_v23, %s1694_s15 }
 0x21a   :  { %v701_v28 = vadd.f32 %v2013_v5, %v700_v27 }
 0x21c   :  { %v718_v29 = vmax.f32 %v701_v28, 0.0  ;;  %v51_v28 = vadd.s32 32, %v1718_v1 }
 0x21e   :  { %v842_v4 = vrot.slane %v718_v29, 7  ;;  %v882_v31 = vrot.slane %v718_v29, 1 }
 0x220   :  { %v891_v32 = vsel %vm352_vm0, %v881_v63, %v882_v31  ;;  %v2052_v34 = vsel %vm303_vm3, %v841_v40, %v842_v4 }
 0x221   :  { %v703_v35 = vpop.f32.mrf.mxu1  ;;  %963 = vrot.lane.b32.xlu1 %v891_v32, %s1697_s0  ;;  %933 = vrot.lane.b32.xlu2 %v718_v29, %s1694_s15 }
 0x222   :  { %v704_v37 = vadd.f32 %v2013_v5, %v703_v35 }
 0x224   :  { %v719_v8 = vmax.f32 %v704_v37, 0.0 }
 0x226   :  { %v843_v38 = vrot.slane %v719_v8, 7  ;;  %v883_v41 = vrot.slane %v719_v8, 1 }
 0x228   :  { %v890_v44 = vsel %vm352_vm0, %v882_v31, %v883_v41  ;;  %v2066_v43 = vsel %vm303_vm3, %v842_v4, %v843_v38  ;;  %v759_v4 = vand.u32 31, %v51_v28 }
 0x229   :  { %v706_v45 = vpop.f32.mrf.mxu1  ;;  %935 = vrot.lane.b32.xlu1 %v719_v8, %s1694_s15  ;;  %v914_v12 = vsel %vm2058_vm10, 0.0, %v890_v44 }
 0x22a   :  { %v707_v47 = vadd.f32 %v2013_v5, %v706_v45  ;;  %965 = vrot.lane.b32.xlu0 %v914_v12, %s1697_s0  ;;  %vm2135_vm1 = vcmp.eq.s32.totalorder %v759_v4, 0 }
 0x22b   :  { %v875_v37 = vsel %vm2135_vm1, 0.0, %v2066_v43 }
 0x22c   :  { %v720_v48 = vmax.f32 %v707_v47, 0.0 }
 0x22e   :  { %v844_v49 = vrot.slane %v720_v48, 7  ;;  %v884_v50 = vrot.slane %v720_v48, 1 }
 0x230   :  { %v889_v16 = vsel %vm352_vm0, %v883_v41, %v884_v50  ;;  %v2077_v52 = vsel %vm303_vm3, %v843_v38, %v844_v49 }
 0x231   :  { %v709_v39 = vpop.f32.mrf.mxu1  ;;  %967 = vrot.lane.b32.xlu2 %v889_v16, %s1697_s0 }
 0x232   :  { %v710_v51 = vadd.f32 %v2013_v5, %v709_v39  ;;  %937 = vrot.lane.b32.xlu0 %v720_v48, %s1694_s15  ;;  %v2157_v39 = vld [vmem:[#allocation2 + $0x68] ss:$0 sm:$0xff] }
 0x234   :  { %v721_v46 = vmax.f32 %v710_v51, 0.0 }
 0x236   :  { %v845_v53 = vrot.slane %v721_v46, 7  ;;  %v885_v54 = vrot.slane %v721_v46, 1 }
 0x238   :  { %v888_v55 = vsel %vm352_vm0, %v884_v50, %v885_v54  ;;  %v2086_v56 = vsel %vm303_vm3, %v844_v49, %v845_v53 }
 0x239   :  { %v712_v57 = vpop.f32.mrf.mxu1  ;;  %969 = vrot.lane.b32.xlu1 %v888_v55, %s1697_s0  ;;  %939 = vrot.lane.b32.xlu2 %v721_v46, %s1694_s15 }
 0x23a   :  { %v713_v58 = vadd.f32 %v2013_v5, %v712_v57 }
 0x23c   :  { %v722_v60 = vmax.f32 %v713_v58, 0.0 }
 0x23e   :  { %v846_v61 = vrot.slane %v722_v60, 7  ;;  %v886_v18 = vrot.slane %v722_v60, 1 }
 0x240   :  { %v887_v0 = vsel %vm352_vm0, %v885_v54, %v886_v18  ;;  %v894_v2 = vsel %vm352_vm0, %v886_v18, %v879_v13  ;;  %v854_v24 = vsel %vm303_vm3, %v846_v61, %v839_v25  ;;  %v847_v3 = vsel %vm303_vm3, %v845_v53, %v846_v61 }
 0x241   :  { %941 = vrot.lane.b32.xlu1 %v722_v60, %s1694_s15  ;;  %971 = vrot.lane.b32.xlu0 %v887_v0, %s1697_s0  ;;  %v918_v5 = vsel %vm2092_vm11, 0.0, %v894_v2  ;;  %v871_v25 = vsel %vm2114_vm12, 0.0, %v854_v24 }
 0x242   :  { %973 = vrot.lane.b32.xlu2 %v918_v5, %s1697_s0 }
 0x260   :  { %v928_v11 = vpop.permute.xlu2 %927 }
 0x261   :  { %v984_v13 = vsel %vm983_vm13, %v871_v25, %v928_v11 }
 0x273   :  { %v962_v22 = vpop.permute.xlu2 %961 }
 0x27b   :  { %v934_v29 = vpop.permute.xlu2 %933 }
 0x280   :  { %v930_v17 = vpop.permute.xlu1 %929 }
 0x281   :  { %v985_v20 = vsel %vm983_vm13, %v2032_v19, %v930_v17  ;;  %v987_v19 = vsel %vm983_vm13, %v2052_v34, %v934_v29 }
 0x282   :  { %v994_v23 = vsel %vm992_vm15, %v985_v20, %v962_v22 }
 0x283   :  { %v960_v14 = vpop.permute.xlu0 %959 }
 0x284   :  { %v993_v15 = vsel %vm992_vm15, %v984_v13, %v960_v14 }
 0x285   :  { %1599 = vmatmul.msk.f32.vlgmr.msra.gmra.mxu2 %vm1002_vm14, %v993_v15 }
 0x28b   :  { %v932_v40 = vpop.permute.xlu0 %931  ;;  %v968_v8 = vpop.permute.xlu2 %967 }
 0x28c   :  { %v986_v63 = vsel %vm983_vm13, %v2040_v26, %v932_v40 }
 0x28d   :  { %1600 = vmatmul.msk.f32.gmra.mxu2 %vm1002_vm14, %v994_v23 }
 0x293   :  { %v964_v30 = vpop.permute.xlu1 %963  ;;  %v940_v12 = vpop.permute.xlu2 %939 }
 0x294   :  { %v995_v27 = vsel %vm992_vm15, %v986_v63, %v964_v30  ;;  %v990_v43 = vsel %vm983_vm13, %v2086_v56, %v940_v12 }
 0x295   :  { %1601 = vmatmul.msk.f32.gmra.mxu2 %vm1002_vm14, %v995_v27 }
 0x29b   :  { %v936_v26 = vpop.permute.xlu1 %935 }
 0x29c   :  { %v966_v31 = vpop.permute.xlu0 %965  ;;  %v988_v36 = vsel %vm983_vm13, %v875_v37, %v936_v26  ;;  %v974_v16 = vpop.permute.xlu2 %973 }
 0x29d   :  { %v996_v32 = vsel %vm992_vm15, %v987_v19, %v966_v31  ;;  %v997_v38 = vsel %vm992_vm15, %v988_v36, %v968_v8 }
 0x29e   :  { %1602 = vmatmul.msk.f32.gmra.mxu2 %vm1002_vm14, %v996_v32 }
 0x2a4   :  { %v938_v34 = vpop.permute.xlu0 %937 }
 0x2a5   :  { %v989_v41 = vsel %vm983_vm13, %v2077_v52, %v938_v34 }
 0x2a6   :  { %1603 = vmatmul.msk.f32.gmra.mxu2 %vm1002_vm14, %v997_v38 }
 0x2ab   :  { %v970_v44 = vpop.permute.xlu1 %969 }
 0x2ac   :  { %v998_v45 = vsel %vm992_vm15, %v989_v41, %v970_v44 }
 0x2ae   :  { %1604 = vmatmul.msk.f32.gmra.mxu2 %vm1002_vm14, %v998_v45 }
 0x2b3   :  { %v972_v47 = vpop.permute.xlu0 %971  ;;  %v942_v49 = vpop.permute.xlu1 %941 }
 0x2b4   :  { %v999_v48 = vsel %vm992_vm15, %v990_v43, %v972_v47  ;;  %v991_v50 = vsel %vm983_vm13, %v847_v3, %v942_v49 }
 0x2b5   :  { %v1000_v52 = vsel %vm992_vm15, %v991_v50, %v974_v16 }
 0x2b6   :  { %1605 = vmatmul.msk.f32.gmra.mxu2 %vm1002_vm14, %v999_v48 }
 0x2be   :  { %1606 = vmatmul.msk.f32.gmra.mxu2 %vm1002_vm14, %v1000_v52 }
 0x308   :  { %v1044_v51 = vpop.f32.mrf.mxu2 }
 0x309   :  { %v1045_v46 = vadd.f32 %v2157_v39, %v1044_v51  ;;  %v1077_v51 = vld [vmem:[#allocation2 + $0x78] sm:$0xff] }
 0x30b   :  { %v2160_v53 = vmax.f32 %v1045_v46, 0.0  ;;  %v1076_v46 = vld [vmem:[#allocation2 + $0x70] sm:$0xff] }
 0x30d   :  { %1136 = vrot.lane.b32.xlu0 %v2160_v53, %s1694_s15  ;;  %v1080_v57 = vrot.slane %v2160_v53, 7  ;;  %v1104_v58 = vrot.slane %v2160_v53, 1 }
 0x310   :  { %v1047_v54 = vpop.f32.mrf.mxu2 }
 0x311   :  { %v1048_v55 = vadd.f32 %v2157_v39, %v1047_v54 }
 0x313   :  { %v1069_v56 = vmax.f32 %v1048_v55, 0.0 }
 0x315   :  { %v1081_v59 = vrot.slane %v1069_v56, 7  ;;  %v1105_v60 = vrot.slane %v1069_v56, 1  ;;  %1138 = vrot.lane.b32.xlu2 %v1069_v56, %s1694_s15 }
 0x317   :  { %v1118_v61 = vsel %vm352_vm0, %v1104_v58, %v1105_v60  ;;  %v2172_v18 = vsel %vm303_vm3, %v1080_v57, %v1081_v59 }
 0x318   :  { %v1050_v0 = vpop.f32.mrf.mxu2  ;;  %1168 = vrot.lane.b32.xlu1 %v1118_v61, %s1697_s0 }
 0x319   :  { %v1051_v2 = vadd.f32 %v2157_v39, %v1050_v0 }
 0x31b   :  { %v1070_v24 = vmax.f32 %v1051_v2, 0.0 }
 0x31d   :  { %v1082_v3 = vrot.slane %v1070_v24, 7  ;;  %v1106_v5 = vrot.slane %v1070_v24, 1 }
 0x31f   :  { %v1117_v6 = vsel %vm352_vm0, %v1105_v60, %v1106_v5  ;;  %v2180_v21 = vsel %vm303_vm3, %v1081_v59, %v1082_v3 }
 0x320   :  { %1140 = vrot.lane.b32.xlu1 %v1070_v24, %s1694_s15  ;;  %1170 = vrot.lane.b32.xlu0 %v1117_v6, %s1697_s0 }
 0x321   :  { %v1053_v7 = vpop.f32.mrf.mxu2 }
 0x322   :  { %v1054_v9 = vadd.f32 %v2157_v39, %v1053_v7 }
 0x324   :  { %v1071_v11 = vmax.f32 %v1054_v9, 0.0 }
 0x326   :  { %v1083_v25 = vrot.slane %v1071_v11, 7  ;;  %v1107_v13 = vrot.slane %v1071_v11, 1 }
 0x328   :  { %1142 = vrot.lane.b32.xlu0 %v1071_v11, %s1694_s15  ;;  %v1116_v14 = vsel %vm352_vm0, %v1106_v5, %v1107_v13  ;;  %v2190_v15 = vsel %vm303_vm3, %v1082_v3, %v1083_v25 }
 0x329   :  { %v1056_v17 = vpop.f32.mrf.mxu2  ;;  %1172 = vrot.lane.b32.xlu2 %v1116_v14, %s1697_s0 }
 0x32a   :  { %v1057_v20 = vadd.f32 %v2157_v39, %v1056_v17 }
 0x32c   :  { %v1072_v22 = vmax.f32 %v1057_v20, 0.0 }
 0x32e   :  { %v1084_v23 = vrot.slane %v1072_v22, 7  ;;  %v1108_v40 = vrot.slane %v1072_v22, 1 }
 0x330   :  { %v1115_v63 = vsel %vm352_vm0, %v1107_v13, %v1108_v40  ;;  %v2198_v30 = vsel %vm303_vm3, %v1083_v25, %v1084_v23 }
 0x331   :  { %v1059_v27 = vpop.f32.mrf.mxu2  ;;  %1144 = vrot.lane.b32.xlu2 %v1072_v22, %s1694_s15  ;;  %v1123_v28 = vsel %vm2058_vm10, 0.0, %v1115_v63  ;;  %v1100_v7 = vsel %vm2135_vm1, 0.0, %v2198_v30 }
 0x332   :  { %v1060_v29 = vadd.f32 %v2157_v39, %v1059_v27  ;;  %1174 = vrot.lane.b32.xlu1 %v1123_v28, %s1697_s0 }
 0x334   :  { %v1073_v4 = vmax.f32 %v1060_v29, 0.0 }
 0x336   :  { %v1085_v19 = vrot.slane %v1073_v4, 7  ;;  %v1109_v31 = vrot.slane %v1073_v4, 1 }
 0x338   :  { %v1114_v32 = vsel %vm352_vm0, %v1108_v40, %v1109_v31  ;;  %v1090_v26 = vsel %vm303_vm3, %v1084_v23, %v1085_v19 }
 0x339   :  { %v1062_v37 = vpop.f32.mrf.mxu2  ;;  %1176 = vrot.lane.b32.xlu0 %v1114_v32, %s1697_s0 }
 0x33a   :  { %v1063_v36 = vadd.f32 %v2157_v39, %v1062_v37  ;;  %1146 = vrot.lane.b32.xlu1 %v1073_v4, %s1694_s15  ;;  %v1273_v37 = vld [vmem:[#allocation2 + $0x90] sm:$0xff] }
 0x33c   :  { %v1074_v42 = vmax.f32 %v1063_v36, 0.0  ;;  %v1274_v36 = vld [vmem:[#allocation2 + $0x98] sm:$0xff] }
 0x33e   :  { %v1086_v8 = vrot.slane %v1074_v42, 7  ;;  %v1110_v38 = vrot.slane %v1074_v42, 1 }
 0x340   :  { %v1113_v34 = vsel %vm352_vm0, %v1109_v31, %v1110_v38  ;;  %v1089_v41 = vsel %vm303_vm3, %v1085_v19, %v1086_v8 }
 0x341   :  { %v1065_v44 = vpop.f32.mrf.mxu2  ;;  %1178 = vrot.lane.b32.xlu2 %v1113_v34, %s1697_s0  ;;  %1148 = vrot.lane.b32.xlu0 %v1074_v42, %s1694_s15  ;;  %v1275_v42 = vld [vmem:[#allocation2 + $0xa0] sm:$0xff] }
 0x342   :  { %v1066_v45 = vadd.f32 %v2157_v39, %v1065_v44  ;;  %v1078_v39 = vld [vmem:[#allocation2 + $0x80] sm:$0xff] }
 0x343   :  { %1245 = vmatpush.msrb.mxu3 %v1078_v39 }
 0x344   :  { %v1075_v12 = vmax.f32 %v1066_v45, 0.0 }
 0x345   :  { %1246 = vmatpush.msrb.mxu3 %v1077_v51 }
 0x346   :  { %v1087_v43 = vrot.slane %v1075_v12, 7  ;;  %v1111_v47 = vrot.slane %v1075_v12, 1 }
 0x347   :  { %1247 = vmatpush.msrb.mxu3 %v1076_v46 }
 0x348   :  { %v1112_v48 = vsel %vm352_vm0, %v1110_v38, %v1111_v47  ;;  %v1119_v49 = vsel %vm352_vm0, %v1111_v47, %v1104_v58  ;;  %v1095_v50 = vsel %vm303_vm3, %v1087_v43, %v1080_v57  ;;  %v1088_v16 = vsel %vm303_vm3, %v1086_v8, %v1087_v43  ;;  %v1276_v8 = vld [vmem:[#allocation2 + $0xa8] sm:$0xff] }
 0x349   :  { %1150 = vrot.lane.b32.xlu2 %v1075_v12, %s1694_s15  ;;  %1180 = vrot.lane.b32.xlu1 %v1112_v48, %s1697_s0  ;;  %v1127_v52 = vsel %vm2092_vm11, 0.0, %v1119_v49  ;;  %v1096_v54 = vsel %vm2114_vm12, 0.0, %v1095_v50  ;;  %v1635_v38 = vld [vmem:[#allocation2 + $0x88] ss:$0 sm:$0xff]  ;;  %v48_v47 = vadd.s32 8, %v1718_v1 }
 0x34a   :  { %1182 = vrot.lane.b32.xlu0 %v1127_v52, %s1697_s0 }
 0x36f   :  { %v1139_v62 = vpop.permute.xlu2 %1138 }
 0x370   :  { %v1193_v58 = vsel %vm983_vm13, %v2172_v18, %v1139_v62 }
 0x37f   :  { %v1137_v53 = vpop.permute.xlu0 %1136 }
 0x380   :  { %v1192_v55 = vsel %vm983_vm13, %v1096_v54, %v1137_v53  ;;  %v1339_v53 = vand.u32 15, %v48_v47 }
 0x382   :  { %vm1381_vm4 = vcmp.eq.s32.totalorder %v1339_v53, 15 }
 0x383   :  { %v1173_v0 = vpop.permute.xlu2 %1172 }
 0x38a   :  { %v1169_v56 = vpop.permute.xlu1 %1168 }
 0x38b   :  { %v1200_v57 = vsel %vm992_vm15, %v1192_v55, %v1169_v56  ;;  %v1145_v6 = vpop.permute.xlu2 %1144 }
 0x38c   :  { %1607 = vmatmul.msk.f32.vlgmr.msrb.gmra.mxu3 %vm1002_vm14, %v1200_v57 }
 0x392   :  { %v1171_v59 = vpop.permute.xlu0 %1170  ;;  %v1141_v61 = vpop.permute.xlu1 %1140 }
 0x393   :  { %v1201_v60 = vsel %vm992_vm15, %v1193_v58, %v1171_v59  ;;  %v1194_v10 = vsel %vm983_vm13, %v2180_v21, %v1141_v61  ;;  %v1196_v21 = vsel %vm983_vm13, %v1100_v7, %v1145_v6  ;;  %v1353_v61 = vand.u32 15, %v2046_v33  ;;  %v1326_v33 = vld [vmem:[#allocation2 + $0xc0] sm:$0xff]  ;;  %v1325_v7 = vld [vmem:[#allocation2 + $0xb8] sm:$0xff] }
 0x394   :  { %1608 = vmatmul.msk.f32.gmra.mxu3 %vm1002_vm14, %v1201_v60  ;;  %v1202_v2 = vsel %vm992_vm15, %v1194_v10, %v1173_v0 }
 0x395   :  { %vm1383_vm5 = vcmp.eq.s32.totalorder %v1353_v61, 15  ;;  %1490 = vmatpush.msra.mxu3 %v1326_v33 }
 0x397   :  { %1491 = vmatpush.msra.mxu3 %v1325_v7 }
 0x39a   :  { %v1143_v24 = vpop.permute.xlu0 %1142 }
 0x39b   :  { %v1195_v3 = vsel %vm983_vm13, %v2190_v15, %v1143_v24  ;;  %v1179_v14 = vpop.permute.xlu2 %1178 }
 0x39c   :  { %1609 = vmatmul.msk.f32.gmra.mxu3 %vm1002_vm14, %v1202_v2 }
 0x3a3   :  { %v1151_v23 = vpop.permute.xlu2 %1150 }
 0x3a4   :  { %v1175_v5 = vpop.permute.xlu1 %1174  ;;  %v1199_v63 = vsel %vm983_vm13, %v1088_v16, %v1151_v23 }
 0x3a5   :  { %v1203_v18 = vsel %vm992_vm15, %v1195_v3, %v1175_v5 }
 0x3a6   :  { %1610 = vmatmul.msk.f32.gmra.mxu3 %vm1002_vm14, %v1203_v18 }
 0x3ab   :  { %v1177_v9 = vpop.permute.xlu0 %1176 }
 0x3ac   :  { %v1204_v11 = vsel %vm992_vm15, %v1196_v21, %v1177_v9  ;;  %v1147_v25 = vpop.permute.xlu1 %1146  ;;  %v1324_v21 = vld [vmem:[#allocation2 + $0xb0] sm:$0xff]  ;;  %v1332_v9 = vand.u32 15, %v1718_v1 }
 0x3ad   :  { %v1197_v13 = vsel %vm983_vm13, %v1090_v26, %v1147_v25  ;;  %1492 = vmatpush.msra.mxu3 %v1324_v21 }
 0x3ae   :  { %1611 = vmatmul.msk.f32.gmra.mxu3 %vm1002_vm14, %v1204_v11  ;;  %v1205_v15 = vsel %vm992_vm15, %v1197_v13, %v1179_v14 }
 0x3b3   :  { %v1149_v17 = vpop.permute.xlu0 %1148 }
 0x3b4   :  { %v1198_v20 = vsel %vm983_vm13, %v1089_v41, %v1149_v17  ;;  %v49_v17 = vadd.s32 16, %v1718_v1 }
 0x3b6   :  { %1612 = vmatmul.msk.f32.gmra.mxu3 %vm1002_vm14, %v1205_v15 }
 0x3bb   :  { %v1181_v35 = vpop.permute.xlu1 %1180 }
 0x3bc   :  { %v1206_v22 = vsel %vm992_vm15, %v1198_v20, %v1181_v35  ;;  %v1183_v40 = vpop.permute.xlu0 %1182  ;;  %v1346_v35 = vand.u32 15, %v49_v17 }
 0x3bd   :  { %v1207_v30 = vsel %vm992_vm15, %v1199_v63, %v1183_v40 }
 0x3be   :  { %1613 = vmatmul.msk.f32.gmra.mxu3 %vm1002_vm14, %v1206_v22 }
 0x3c6   :  { %1614 = vmatmul.msk.f32.gmra.mxu3 %vm1002_vm14, %v1207_v30 }
 0x40f   :  { %v1249_v27 = vpop.f32.mrf.mxu3 }
 0x417   :  { %v1252_v28 = vpop.f32.mrf.mxu3 }
 0x41f   :  { %v1255_v29 = vpop.f32.mrf.mxu3 }
 0x429   :  { %v1258_v4 = vpop.f32.mrf.mxu3 }
 0x431   :  { %v1261_v19 = vpop.f32.mrf.mxu3 }
 0x439   :  { %v1264_v31 = vpop.f32.mrf.mxu3 }
 0x441   :  { %v1267_v32 = vpop.f32.mrf.mxu3 }
 0x449   :  { %v1270_v26 = vpop.f32.mrf.mxu3 }
 0x44a   :  { %1299 = vmatpush.msrb.mxu2 %v1270_v26  ;;  %v1536_v26 = vld [vmem:[#allocation2 + $0xe0] sm:$0xff] }
 0x44c   :  { %1300 = vmatpush.msrb.mxu2 %v1267_v32 }
 0x44e   :  { %1301 = vmatpush.msrb.mxu2 %v1264_v31 }
 0x450   :  { %1302 = vmatpush.msrb.mxu2 %v1261_v19 }
 0x452   :  { %1303 = vmatpush.msrb.mxu2 %v1258_v4 }
 0x454   :  { %1304 = vmatpush.msrb.mxu2 %v1255_v29 }
 0x456   :  { %1305 = vmatpush.msrb.mxu2 %v1252_v28 }
 0x458   :  { %1306 = vmatpush.msrb.mxu2 %v1249_v27 }
 0x459   :  { %1615 = vmatmul.msk.f32.vlgmr.msrb.gmra.mxu2 %vm1278_vm2, %v1273_v37  ;;  %v1535_v37 = vld [vmem:[#allocation2 + $0xd8] sm:$0xff] }
 0x45a   :  { %1556 = vmatpush.msra.mxu2 %v1536_v26 }
 0x45c   :  { %1557 = vmatpush.msra.mxu2 %v1535_v37 }
 0x461   :  { %1616 = vmatmul.msk.f32.gmra.mxu2 %vm1278_vm2, %v1274_v36 }
 0x469   :  { %1617 = vmatmul.msk.f32.gmra.mxu2 %vm1278_vm2, %v1275_v42 }
 0x471   :  { %1618 = vmatmul.msk.f32.gmra.mxu2 %vm1278_vm2, %v1276_v8  ;;  %v1636_v8 = vld [vmem:[#allocation2 + $0xc8] ss:$0 sm:$0xff] }
 0x4dc   :  { %v1308_v34 = vpop.f32.mrf.mxu2 }
 0x4dd   :  { %v1309_v41 = vadd.f32 %v1635_v38, %v1308_v34 }
 0x4df   :  { %v1320_v44 = vmax.f32 %v1309_v41, 0.0 }
 0x4e1   :  { %1428 = vrot.lane.b32.xlu1 %v1320_v44, %s1694_s15  ;;  %v1384_v48 = vrot.slane %v1320_v44, 7  ;;  %v1404_v49 = vrot.slane %v1320_v44, 1 }
 0x4e4   :  { %v1311_v45 = vpop.f32.mrf.mxu2 }
 0x4e5   :  { %v1312_v12 = vadd.f32 %v1635_v38, %v1311_v45 }
 0x4e7   :  { %v1321_v43 = vmax.f32 %v1312_v12, 0.0 }
 0x4e9   :  { %v1385_v50 = vrot.slane %v1321_v43, 7  ;;  %v1405_v16 = vrot.slane %v1321_v43, 1  ;;  %1430 = vrot.lane.b32.xlu0 %v1321_v43, %s1694_s15 }
 0x4eb   :  { %v1410_v52 = vsel %vm352_vm0, %v1404_v49, %v1405_v16  ;;  %v1390_v39 = vsel %vm303_vm3, %v1384_v48, %v1385_v50 }
 0x4ec   :  { %v1314_v51 = vpop.f32.mrf.mxu2  ;;  %1444 = vrot.lane.b32.xlu2 %v1410_v52, %s1697_s0 }
 0x4ed   :  { %v1315_v46 = vadd.f32 %v1635_v38, %v1314_v51 }
 0x4ef   :  { %v1322_v54 = vmax.f32 %v1315_v46, 0.0 }
 0x4f1   :  { %v1386_v55 = vrot.slane %v1322_v54, 7  ;;  %v1406_v56 = vrot.slane %v1322_v54, 1 }
 0x4f3   :  { %v1409_v57 = vsel %vm352_vm0, %v1405_v16, %v1406_v56  ;;  %v1389_v62 = vsel %vm303_vm3, %v1385_v50, %v1386_v55  ;;  %v1637_v16 = vld [vmem:[#allocation2 + $0xe8] ss:$0 sm:$0xff] }
 0x4f4   :  { %v1317_v58 = vpop.f32.mrf.mxu2  ;;  %1432 = vrot.lane.b32.xlu2 %v1322_v54, %s1694_s15  ;;  %v1421_v59 = vsel %vm1381_vm4, 0.0, %v1409_v57 }
 0x4f5   :  { %v1318_v60 = vadd.f32 %v1635_v38, %v1317_v58  ;;  %1446 = vrot.lane.b32.xlu1 %v1421_v59, %s1697_s0 }
 0x4f7   :  { %v1323_v10 = vmax.f32 %v1318_v60, 0.0 }
 0x4f9   :  { %v1387_v0 = vrot.slane %v1323_v10, 7  ;;  %v1407_v2 = vrot.slane %v1323_v10, 1 }
 0x4fb   :  { %v1408_v24 = vsel %vm352_vm0, %v1406_v56, %v1407_v2  ;;  %v1411_v3 = vsel %vm352_vm0, %v1407_v2, %v1404_v49  ;;  %v1391_v5 = vsel %vm303_vm3, %v1387_v0, %v1384_v48  ;;  %v1388_v18 = vsel %vm303_vm3, %v1386_v55, %v1387_v0  ;;  %v1510_v49 = vld [vmem:[#allocation2 + $0xd0] sm:$0x3] }
 0x4fc   :  { %1448 = vrot.lane.b32.xlu0 %v1408_v24, %s1697_s0  ;;  %v1423_v6 = vsel %vm1383_vm5, 0.0, %v1411_v3  ;;  %vm1376_vm0 = vcmp.eq.s32.totalorder %v1332_v9, 0  ;;  %vm1378_vm3 = vcmp.eq.s32.totalorder %v1346_v35, 0 }
 0x4fd   :  { %1434 = vrot.lane.b32.xlu1 %v1323_v10, %s1694_s15  ;;  %1450 = vrot.lane.b32.xlu2 %v1423_v6, %s1697_s0  ;;  %v1400_v25 = vsel %vm1376_vm0, 0.0, %v1391_v5  ;;  %v1402_v30 = vsel %vm1378_vm3, 0.0, %v1389_v62  ;;  %s1698_s15 = smov [#allocation5]  }
 0x4fe   :  { %s1570_s21 = sshll.u32 %s1698_s15, 4  ;;  %s1571_s21 = int_to_ptr.vmem [resolvable:$true] %s1570_s21 }
 0x546   :  { %v1445_v13 = vpop.permute.xlu2 %1444 }
 0x54e   :  { %v1433_v63 = vpop.permute.xlu2 %1432 }
 0x54f   :  { %v1458_v27 = vsel %vm983_vm13, %v1402_v30, %v1433_v63 }
 0x553   :  { %v1429_v11 = vpop.permute.xlu1 %1428 }
 0x554   :  { %v1456_v14 = vsel %vm983_vm13, %v1400_v25, %v1429_v11 }
 0x555   :  { %v1460_v15 = vsel %vm992_vm15, %v1456_v14, %v1445_v13 }
 0x556   :  { %1619 = vmatmul.msk.f32.vlgmr.msra.gmra.mxu3 %vm1002_vm14, %v1460_v15 }
 0x557   :  { %v1451_v19 = vpop.permute.xlu2 %1450 }
 0x55b   :  { %v1431_v20 = vpop.permute.xlu0 %1430 }
 0x55c   :  { %v1457_v22 = vsel %vm983_vm13, %v1390_v39, %v1431_v20 }
 0x567   :  { %v1447_v23 = vpop.permute.xlu1 %1446 }
 0x568   :  { %v1461_v40 = vsel %vm992_vm15, %v1457_v22, %v1447_v23 }
 0x569   :  { %1620 = vmatmul.msk.f32.gmra.mxu3 %vm1002_vm14, %v1461_v40 }
 0x56e   :  { %v1449_v28 = vpop.permute.xlu0 %1448 }
 0x56f   :  { %v1462_v29 = vsel %vm992_vm15, %v1458_v27, %v1449_v28  ;;  %v1435_v1 = vpop.permute.xlu1 %1434 }
 0x570   :  { %v1459_v4 = vsel %vm983_vm13, %v1388_v18, %v1435_v1 }
 0x571   :  { %1621 = vmatmul.msk.f32.gmra.mxu3 %vm1002_vm14, %v1462_v29  ;;  %v1463_v31 = vsel %vm992_vm15, %v1459_v4, %v1451_v19 }
 0x579   :  { %1622 = vmatmul.msk.f32.gmra.mxu3 %vm1002_vm14, %v1463_v31 }
 0x5d9   :  { %v1494_v32 = vpop.f32.mrf.mxu3 }
 0x5da   :  { %v1495_v12 = vadd.f32 %v1636_v8, %v1494_v32 }
 0x5dc   :  { %v1506_v48 = vmax.f32 %v1495_v12, 0.0 }
 0x5ec   :  { %v1497_v36 = vpop.f32.mrf.mxu3 }
 0x5ed   :  { %v1498_v44 = vadd.f32 %v1636_v8, %v1497_v36 }
 0x5ef   :  { %v1507_v47 = vmax.f32 %v1498_v44, 0.0 }
 0x5f4   :  { %v1500_v42 = vpop.f32.mrf.mxu3 }
 0x5f5   :  { %v1501_v34 = vadd.f32 %v1636_v8, %v1500_v42 }
 0x5f7   :  { %v1508_v43 = vmax.f32 %v1501_v34, 0.0 }
 0x5fc   :  { %v1503_v38 = vpop.f32.mrf.mxu3 }
 0x5fd   :  { %v1504_v41 = vadd.f32 %v1636_v8, %v1503_v38 }
 0x5ff   :  { %v1509_v45 = vmax.f32 %v1504_v41, 0.0 }
 0x601   :  { %1527 = vmatpush.msrb.mxu1 %v1509_v45 }
 0x603   :  { %1528 = vmatpush.msrb.mxu1 %v1508_v43 }
 0x605   :  { %1529 = vmatpush.msrb.mxu1 %v1507_v47 }
 0x607   :  { %1530 = vmatpush.msrb.mxu1 %v1506_v48 }
 0x608   :  { %1623 = vmatmul.msk.f32.vlgmr.msrb.gmra.mxu1 %vm1511_vm6, %v1510_v49 }
 0x685   :  { %v1532_v50 = vpop.f32.mrf.mxu1 }
 0x686   :  { %1624 = vmatmul.msk.f32.vlgmr.msra.gmra.mxu2 %vm992_vm15, %v1532_v50 }
 0x709   :  { %v1559_v52 = vpop.f32.mrf.mxu2 }
 0x70a   :  { %v1560_v39 = vadd.f32 %v1637_v16, %v1559_v52 }
 0x70c   :  { %1638 = vtanh.f32 %v1560_v39 }
 0x712   :  { %v1639_v51 = vpop.eup %1638 }
 0x713   :  { %1564 = vst.msk [vmem:[#allocation5] sm:$0x3] %vm1563_vm7, %v1639_v51 }
 0x714   :  { %1575 = dma.vmem_to_hbm [thread:$0]  %s1571_s21, 32, %s1573_s24, [#allocation4]  }
 0x715   :  { %1690 = dma.done.wait [#allocation4], 32  }
 0x716   :  { %1691 = vsyncadd [#allocation4], 4294967264 }
 0x717   :  { %1580 = vsyncpa [#allocation3], 1 }
 0x718   :  { %1581 = vsyncpa [#allocation4], 1 }

</bundles_post_ra>
